<compile_context>
chip_gen: v7x
topology: tpu7x:2x2x1
jax: 0.10.0
libtpu: 0.0.40
codegen_flags: <defaults>
</compile_context>

<pallas_src>
import math
import numpy as np
import jax
import jax.numpy as jnp
from jax.experimental import pallas as pl
from jax.experimental.pallas import tpu as pltpu


# ----------------------------------------------------------------------------
# Rotary matrix exactly as in the PyTorch source (including the odd (i-1) term).
# ----------------------------------------------------------------------------
def get_rotary_matrix(context_window, embedding_dim):
    R = np.zeros((context_window, embedding_dim, embedding_dim), dtype=np.float32)
    for position in range(context_window):
        for i in range(embedding_dim // 2):
            theta = 10000.0 ** (-2.0 * (i - 1) / embedding_dim)
            m_theta = position * theta
            R[position, 2 * i, 2 * i] = np.cos(m_theta)
            R[position, 2 * i, 2 * i + 1] = -np.sin(m_theta)
            R[position, 2 * i + 1, 2 * i] = np.sin(m_theta)
            R[position, 2 * i + 1, 2 * i + 1] = np.cos(m_theta)
    return R


def rotary_cos_sin_from_R(R):
    """Elementwise factors so that  q @ R[t]  ==  q * C[t] + pair_swap(q) * S[t]
    (exact: R is 2x2 block-diagonal)."""
    C = np.ascontiguousarray(np.einsum("tii->ti", R)).astype(np.float32)
    S = np.zeros_like(C)
    S[:, 0::2] = np.einsum("tii->ti", R[:, 1::2, 0::2])   # +sin at even lanes
    S[:, 1::2] = np.einsum("tii->ti", R[:, 0::2, 1::2])   # -sin at odd lanes
    return C, S


# ----------------------------------------------------------------------------
# Host-side one-time parameter packing (torch (out, in) convention -> MXU-friendly,
# weights stored bf16; RoPE tables tiled over heads and over the batch block).
# ----------------------------------------------------------------------------
def prepare_params(wq, wk, wv, wo, bo, C, S, batch_block):
    H, D, _ = np.asarray(wq).shape

    def stack_t(w):  # (H, out, in) -> (in, H*out): column h*D+o holds w[h, o, :]
        return np.transpose(np.asarray(w), (2, 0, 1)).reshape(D, H * D)

    wqkv_t = np.concatenate([stack_t(wq), stack_t(wk), stack_t(wv)], axis=1)  # (D, 3*H*D)
    C_full = np.tile(np.tile(np.asarray(C), (1, H)), (batch_block, 1))        # (batch_block*T, H*D)
    S_full = np.tile(np.tile(np.asarray(S), (1, H)), (batch_block, 1))
    return {
        "wqkv_t": jnp.asarray(wqkv_t, jnp.bfloat16),                 # bf16 MXU operand
        "rope_C": jnp.asarray(C_full, jnp.float32),                  # (Bblk*T, H*D)
        "rope_S": jnp.asarray(S_full, jnp.float32),                  # (Bblk*T, H*D)
        "wo_t": jnp.asarray(np.asarray(wo).T, jnp.bfloat16),         # (H*D, D)
        "bo_row": jnp.asarray(np.asarray(bo).reshape(1, D), jnp.float32),
    }


# ----------------------------------------------------------------------------
# Fused multi-head RoPE attention kernel (one grid step per batch-row block).
# ----------------------------------------------------------------------------
def make_rope_mha_kernel(n_heads, d_head, block_b, seq):
    hd = n_heads * d_head
    rows = block_b * seq
    inv_sqrt_d = 1.0 / math.sqrt(d_head)

    def kernel(x_ref, wqkv_ref, c_ref, s_ref, wo_ref, bo_ref, heads_ref, mha_ref):
        # ---- QKV for ALL heads and ALL batch rows in one bf16 MXU matmul -------
        x = x_ref[...].astype(jnp.bfloat16)                                  # (rows, D)
        qkv = jnp.dot(x, wqkv_ref[...], preferred_element_type=jnp.float32)  # (rows, 3*H*D) f32
        q = qkv[:, :hd]
        k = qkv[:, hd:2 * hd]
        v = qkv[:, 2 * hd:]

        # ---- RoPE once over the full head width (f32 elementwise) --------------
        C = c_ref[...]                                                       # (rows, H*D)
        S = s_ref[...]
        lane = jax.lax.broadcasted_iota(jnp.int32, (rows, hd), 1)
        even_lane = (lane % 2) == 0

        def rope(t):  # pair swap via XLU rolls + parity select; pairs never cross a head
            nxt = pltpu.roll(t, hd - 1, axis=1)   # nxt[j] = t[j+1]
            prv = pltpu.roll(t, 1, axis=1)        # prv[j] = t[j-1]
            return t * C + jnp.where(even_lane, nxt, prv) * S

        q_rot = rope(q).astype(jnp.bfloat16)
        k_rot = rope(k).astype(jnp.bfloat16)
        v_bf = v.astype(jnp.bfloat16)

        # ---- per-head attention, batched over the batch block ------------------
        for h in range(n_heads):                  # static unroll, H small
            lo = h * d_head
            qh = q_rot[:, lo:lo + d_head].reshape(block_b, seq, d_head)
            kh = k_rot[:, lo:lo + d_head].reshape(block_b, seq, d_head)
            vh = v_bf[:, lo:lo + d_head].reshape(block_b, seq, d_head)
            s = jnp.einsum("bqd,bkd->bqk", qh, kh,
                           preferred_element_type=jnp.float32) * inv_sqrt_d  # (Bblk,T,T) f32
            m = jnp.max(s, axis=-1, keepdims=True)
            e = jnp.exp(s - m)                    # non-causal (matches SDPA w/o mask)
            p = e * pl.reciprocal(jnp.sum(e, axis=-1, keepdims=True), approx=True)
            o = jnp.einsum("bqk,bkd->bqd", p.astype(jnp.bfloat16), vh,
                           preferred_element_type=jnp.float32)               # (Bblk,T,D) f32
            # write head result straight into its lane slice -> no concatenate
            heads_ref[:, lo:lo + d_head] = o.reshape(rows, d_head).astype(heads_ref.dtype)

        # ---- output projection over all heads / all rows ------------------------
        heads_bf = heads_ref[...].astype(jnp.bfloat16)                       # (rows, H*D)
        y = jnp.dot(heads_bf, wo_ref[...], preferred_element_type=jnp.float32) + bo_ref[...]
        mha_ref[...] = y.astype(mha_ref.dtype)                               # (rows, D)

    return kernel


def rope_multihead_attention_pallas(x, params, *, block_b=None):
    """Returns (heads_concat (B,T,H*D), mha_out (B,T,D)).

    heads_concat[..., h*D:(h+1)*D] is exactly RoPEAttentionHead(h).forward(x);
    mha_out is RoPEMultiheadAttention.forward(x) (eval mode)."""
    B, T, D = x.shape
    HD = params["wo_t"].shape[0]
    H = HD // D
    if block_b is None:
        block_b = B            # fold whole batch into MXU rows (v5e/v6e); use B//2 on v7x (2 TCs)
    nb = B // block_b
    rows_blk = block_b * T

    x2 = x.reshape(B * T, D)   # free, contiguous; keeps all kernel refs 2-D & lane-dense
    kernel = make_rope_mha_kernel(H, D, block_b, T)

    heads2, out2 = pl.pallas_call(
        kernel,
        out_shape=(jax.ShapeDtypeStruct((B * T, HD), jnp.float32),
                   jax.ShapeDtypeStruct((B * T, D), jnp.float32)),
        grid=(nb,),
        in_specs=[
            pl.BlockSpec((rows_blk, D), lambda i: (i, 0)),       # x rows
            pl.BlockSpec((D, 3 * HD), lambda i: (0, 0)),         # stacked QKV weights (bf16)
            pl.BlockSpec((rows_blk, HD), lambda i: (0, 0)),      # rope cos table
            pl.BlockSpec((rows_blk, HD), lambda i: (0, 0)),      # rope sin table
            pl.BlockSpec((HD, D), lambda i: (0, 0)),             # output projection (bf16)
            pl.BlockSpec((1, D), lambda i: (0, 0)),              # output bias
        ],
        out_specs=(pl.BlockSpec((rows_blk, HD), lambda i: (i, 0)),
                   pl.BlockSpec((rows_blk, D), lambda i: (i, 0))),
        compiler_params=pltpu.CompilerParams(dimension_semantics=("parallel",)),
    )(x2, params["wqkv_t"], params["rope_C"], params["rope_S"],
      params["wo_t"], params["bo_row"])
    return heads2.reshape(B, T, HD), out2.reshape(B, T, D)


# ----------------------------------------------------------------------------
# Pure-JAX reference mirroring the PyTorch math (full rotary matmul, no dropout).
# ----------------------------------------------------------------------------
def reference_forward(x, R, wq, wk, wv, wo, bo):
    B, T, D = x.shape
    H = wq.shape[0]
    hi = jax.lax.Precision.HIGHEST
    heads = []
    for h in range(H):
        q = jnp.einsum("btd,ed->bte", x, wq[h], precision=hi)
        k = jnp.einsum("btd,ed->bte", x, wk[h], precision=hi)
        v = jnp.einsum("btd,ed->bte", x, wv[h], precision=hi)
        q_rot = jnp.einsum("btd,tde->bte", q, R, precision=hi)
        k_rot = jnp.einsum("btd,tde->bte", k, R, precision=hi)
        s = jnp.einsum("bqd,bkd->bqk", q_rot, k_rot, precision=hi) / math.sqrt(D)
        p = jax.nn.softmax(s, axis=-1)                  # non-causal, no dropout (eval)
        heads.append(jnp.einsum("bqk,bkd->bqd", p, v, precision=hi))
    cat = jnp.concatenate(heads, axis=-1)
    out = jnp.einsum("bte,de->btd", cat, wo, precision=hi) + bo
    return cat, out


# ----------------------------------------------------------------------------
if __name__ == "__main__":
    # Small shapes consistent with the module; d_model chosen lane-dense (multiple of 128).
    B, T, D, H = 2, 16, 128, 4

    key = jax.random.PRNGKey(0)
    kq, kk, kv, kwo, kbo, kx = jax.random.split(key, 6)
    wq = jax.random.normal(kq, (H, D, D), jnp.float32) * 0.05   # per-head, torch (out, in)
    wk = jax.random.normal(kk, (H, D, D), jnp.float32) * 0.05
    wv = jax.random.normal(kv, (H, D, D), jnp.float32) * 0.05
    wo = jax.random.normal(kwo, (D, H * D), jnp.float32) * 0.05  # torch (out, in)
    bo = jax.random.normal(kbo, (D,), jnp.float32) * 0.05
    x = jax.random.normal(kx, (B, T, D), jnp.float32)

    R_np = get_rotary_matrix(T, D)
    C_np, S_np = rotary_cos_sin_from_R(R_np)
    params = prepare_params(wq, wk, wv, wo, bo, C_np, S_np, batch_block=B)

    fwd = jax.jit(rope_multihead_attention_pallas)
    heads, out = fwd(x, params)
    heads, out = jax.block_until_ready((heads, out))
    assert heads.shape == (B, T, H * D), heads.shape
    assert out.shape == (B, T, D), out.shape

    ref_heads, ref_out = reference_forward(x, jnp.asarray(R_np), wq, wk, wv, wo, bo)
    # bf16 MXU operands + approx reciprocal => bf16-level tolerances vs. f32 HIGHEST reference.
    np.testing.assert_allclose(np.asarray(heads), np.asarray(ref_heads), rtol=5e-2, atol=5e-2)
    np.testing.assert_allclose(np.asarray(out), np.asarray(ref_out), rtol=5e-2, atol=5e-2)

    print("KERNEL_OK")
</pallas_src>

<mosaic_0001>
module attributes {stable_mosaic.version = 11 : i64} {
  func.func @kernel(%arg0: i32, %arg1: memref<32x128xf32, #tpu.memory_space<vmem>>, %arg2: memref<128x1536xbf16, #tpu.memory_space<vmem>>, %arg3: memref<32x512xf32, #tpu.memory_space<vmem>>, %arg4: memref<32x512xf32, #tpu.memory_space<vmem>>, %arg5: memref<512x128xbf16, #tpu.memory_space<vmem>>, %arg6: memref<1x128xf32, #tpu.memory_space<vmem>>, %arg7: memref<32x512xf32, #tpu.memory_space<vmem>>, %arg8: memref<32x128xf32, #tpu.memory_space<vmem>>) attributes {dimension_semantics = [#tpu.dimension_semantics<parallel>], iteration_bounds = array<i64: 1>, scalar_prefetch = 0 : i64, scratch_operands = 0 : i64, tpu.core_type = #tpu.core_type<tc>, window_params = [{transform_indices = @transform_0, window_bounds = array<i64: 32, 128>}, {pipeline_mode = #tpu.pipeline_mode<synchronous>, transform_indices = @transform_1, window_bounds = array<i64: 128, 1536>}, {pipeline_mode = #tpu.pipeline_mode<synchronous>, transform_indices = @transform_2, window_bounds = array<i64: 32, 512>}, {pipeline_mode = #tpu.pipeline_mode<synchronous>, transform_indices = @transform_3, window_bounds = array<i64: 32, 512>}, {pipeline_mode = #tpu.pipeline_mode<synchronous>, transform_indices = @transform_4, window_bounds = array<i64: 512, 128>}, {pipeline_mode = #tpu.pipeline_mode<synchronous>, transform_indices = @transform_5, window_bounds = array<i64: 1, 128>}, {transform_indices = @transform_6, window_bounds = array<i64: 32, 512>}, {transform_indices = @transform_7, window_bounds = array<i64: 32, 128>}]} {
    %c0 = arith.constant 0 : index
    %c0_0 = arith.constant 0 : index
    %0 = vector.load %arg1[%c0, %c0_0] : memref<32x128xf32, #tpu.memory_space<vmem>>, vector<32x128xf32>
    %1 = arith.truncf %0 : vector<32x128xf32> to vector<32x128xbf16>
    %c0_1 = arith.constant 0 : index
    %c0_2 = arith.constant 0 : index
    %2 = vector.load %arg2[%c0_1, %c0_2] : memref<128x1536xbf16, #tpu.memory_space<vmem>>, vector<128x1536xbf16>
    %cst = arith.constant dense<0.000000e+00> : vector<32x1536xf32>
    %3 = tpu.matmul %1, %2, %cst {dimension_numbers = #tpu.dot_dimension_numbers<[1], [0], [0], [1], [0, 0, 1, 1], [], []>} : vector<32x128xbf16>, vector<128x1536xbf16>, vector<32x1536xf32> -> vector<32x1536xf32>
    %4 = vector.extract_strided_slice %3 {offsets = [0, 0], sizes = [32, 512], strides = [1, 1]} : vector<32x1536xf32> to vector<32x512xf32>
    %5 = vector.extract_strided_slice %3 {offsets = [0, 512], sizes = [32, 512], strides = [1, 1]} : vector<32x1536xf32> to vector<32x512xf32>
    %6 = vector.extract_strided_slice %3 {offsets = [0, 1024], sizes = [32, 512], strides = [1, 1]} : vector<32x1536xf32> to vector<32x512xf32>
    %c0_3 = arith.constant 0 : index
    %c0_4 = arith.constant 0 : index
    %7 = vector.load %arg3[%c0_3, %c0_4] : memref<32x512xf32, #tpu.memory_space<vmem>>, vector<32x512xf32>
    %c0_5 = arith.constant 0 : index
    %c0_6 = arith.constant 0 : index
    %8 = vector.load %arg4[%c0_5, %c0_6] : memref<32x512xf32, #tpu.memory_space<vmem>>, vector<32x512xf32>
    %9 = tpu.iota {dimensions = array<i32: 1>} : vector<32x512xi32>
    %c2_i32 = arith.constant 2 : i32
    %c0_i32 = arith.constant 0 : i32
    %10 = arith.cmpi eq, %c2_i32, %c0_i32 : i32
    %c1_i32 = arith.constant 1 : i32
    %11 = arith.select %10, %c1_i32, %c2_i32 : i32
    %12 = vector.broadcast %11 : i32 to vector<32x512xi32>
    %13 = arith.remsi %9, %12 : vector<32x512xi32>
    %c0_i32_7 = arith.constant 0 : i32
    %14 = vector.broadcast %c0_i32_7 : i32 to vector<32x512xi32>
    %15 = arith.cmpi ne, %13, %14 : vector<32x512xi32>
    %c0_i32_8 = arith.constant 0 : i32
    %16 = vector.broadcast %c0_i32_8 : i32 to vector<32x512xi32>
    %17 = arith.cmpi slt, %13, %16 : vector<32x512xi32>
    %c0_i32_9 = arith.constant 0 : i32
    %18 = arith.cmpi slt, %11, %c0_i32_9 : i32
    %19 = vector.broadcast %18 : i1 to vector<32x512xi1>
    %20 = vector.broadcast %19 : vector<32x512xi1> to vector<32x512xi1>
    %21 = arith.xori %17, %20 : vector<32x512xi1>
    %22 = arith.andi %21, %15 : vector<32x512xi1>
    %23 = vector.broadcast %11 : i32 to vector<32x512xi32>
    %24 = arith.addi %13, %23 : vector<32x512xi32>
    %25 = arith.select %22, %24, %13 : vector<32x512xi1>, vector<32x512xi32>
    %c0_i32_10 = arith.constant 0 : i32
    %26 = vector.broadcast %c0_i32_10 : i32 to vector<32x512xi32>
    %27 = arith.cmpi eq, %25, %26 : vector<32x512xi32>
    %c511_i32 = arith.constant 511 : i32
    %28 = tpu.dynamic_rotate %4 by %c511_i32 dim 1 : vector<32x512xf32>, i32 -> vector<32x512xf32>
    %c1_i32_11 = arith.constant 1 : i32
    %29 = tpu.dynamic_rotate %4 by %c1_i32_11 dim 1 : vector<32x512xf32>, i32 -> vector<32x512xf32>
    %30 = arith.mulf %4, %7 : vector<32x512xf32>
    %31 = arith.select %27, %28, %29 : vector<32x512xi1>, vector<32x512xf32>
    %32 = arith.mulf %31, %8 : vector<32x512xf32>
    %33 = arith.addf %30, %32 : vector<32x512xf32>
    %34 = arith.truncf %33 : vector<32x512xf32> to vector<32x512xbf16>
    %c511_i32_12 = arith.constant 511 : i32
    %35 = tpu.dynamic_rotate %5 by %c511_i32_12 dim 1 : vector<32x512xf32>, i32 -> vector<32x512xf32>
    %c1_i32_13 = arith.constant 1 : i32
    %36 = tpu.dynamic_rotate %5 by %c1_i32_13 dim 1 : vector<32x512xf32>, i32 -> vector<32x512xf32>
    %37 = arith.mulf %5, %7 : vector<32x512xf32>
    %38 = arith.select %27, %35, %36 : vector<32x512xi1>, vector<32x512xf32>
    %39 = arith.mulf %38, %8 : vector<32x512xf32>
    %40 = arith.addf %37, %39 : vector<32x512xf32>
    %41 = arith.truncf %40 : vector<32x512xf32> to vector<32x512xbf16>
    %42 = arith.truncf %6 : vector<32x512xf32> to vector<32x512xbf16>
    %43 = vector.extract_strided_slice %34 {offsets = [0, 0], sizes = [32, 128], strides = [1, 1]} : vector<32x512xbf16> to vector<32x128xbf16>
    %44 = vector.shape_cast %43 : vector<32x128xbf16> to vector<2x16x128xbf16>
    %45 = vector.extract_strided_slice %41 {offsets = [0, 0], sizes = [32, 128], strides = [1, 1]} : vector<32x512xbf16> to vector<32x128xbf16>
    %46 = vector.shape_cast %45 : vector<32x128xbf16> to vector<2x16x128xbf16>
    %47 = vector.extract_strided_slice %42 {offsets = [0, 0], sizes = [32, 128], strides = [1, 1]} : vector<32x512xbf16> to vector<32x128xbf16>
    %48 = vector.shape_cast %47 : vector<32x128xbf16> to vector<2x16x128xbf16>
    "tpu.trace_start"() <{level = 10 : i32, message = "bqd,bkd->bqk"}> : () -> ()
    %cst_14 = arith.constant dense<0.000000e+00> : vector<2x16x16xf32>
    %49 = tpu.matmul %44, %46, %cst_14 {dimension_numbers = #tpu.dot_dimension_numbers<[2], [2], [1], [1], [0, 0, 0, 1, 1, 1], [0], [0]>} : vector<2x16x128xbf16>, vector<2x16x128xbf16>, vector<2x16x16xf32> -> vector<2x16x16xf32>
    "tpu.trace_stop"() : () -> ()
    %cst_15 = arith.constant 0.0883883461 : f32
    %50 = vector.broadcast %cst_15 : f32 to vector<2x16x16xf32>
    %51 = arith.mulf %49, %50 : vector<2x16x16xf32>
    %cst_16 = arith.constant dense<0xFF800000> : vector<2x16xf32>
    %52 = vector.multi_reduction <maximumf>, %51, %cst_16 [2] : vector<2x16x16xf32> to vector<2x16xf32>
    %53 = vector.shape_cast %52 : vector<2x16xf32> to vector<2x16x1xf32>
    %54 = vector.broadcast %53 : vector<2x16x1xf32> to vector<2x16x16xf32>
    %55 = arith.subf %51, %54 : vector<2x16x16xf32>
    %56 = math.exp %55 : vector<2x16x16xf32>
    %cst_17 = arith.constant dense<0.000000e+00> : vector<2x16xf32>
    %57 = vector.multi_reduction <add>, %56, %cst_17 [2] : vector<2x16x16xf32> to vector<2x16xf32>
    %58 = vector.shape_cast %57 : vector<2x16xf32> to vector<2x16x1xf32>
    %59 = tpu.reciprocal %58 {approx = true} : vector<2x16x1xf32> -> vector<2x16x1xf32>
    %60 = vector.broadcast %59 : vector<2x16x1xf32> to vector<2x16x16xf32>
    %61 = arith.mulf %56, %60 : vector<2x16x16xf32>
    %62 = arith.truncf %61 : vector<2x16x16xf32> to vector<2x16x16xbf16>
    "tpu.trace_start"() <{level = 10 : i32, message = "bqk,bkd->bqd"}> : () -> ()
    %cst_18 = arith.constant dense<0.000000e+00> : vector<2x16x128xf32>
    %63 = tpu.matmul %62, %48, %cst_18 {dimension_numbers = #tpu.dot_dimension_numbers<[2], [1], [1], [2], [0, 0, 0, 1, 1, 2], [0], [0]>} : vector<2x16x16xbf16>, vector<2x16x128xbf16>, vector<2x16x128xf32> -> vector<2x16x128xf32>
    "tpu.trace_stop"() : () -> ()
    %64 = vector.shape_cast %63 : vector<2x16x128xf32> to vector<32x128xf32>
    %c0_19 = arith.constant 0 : index
    %c0_20 = arith.constant 0 : index
    %65 = vector.load %arg7[%c0_19, %c0_20] : memref<32x512xf32, #tpu.memory_space<vmem>>, vector<32x128xf32>
    tpu.vector_store %arg7[%c0_19, %c0_20], %64 {strides = array<i32>} : memref<32x512xf32, #tpu.memory_space<vmem>>, vector<32x128xf32>,
    %66 = vector.extract_strided_slice %34 {offsets = [0, 128], sizes = [32, 128], strides = [1, 1]} : vector<32x512xbf16> to vector<32x128xbf16>
    %67 = vector.shape_cast %66 : vector<32x128xbf16> to vector<2x16x128xbf16>
    %68 = vector.extract_strided_slice %41 {offsets = [0, 128], sizes = [32, 128], strides = [1, 1]} : vector<32x512xbf16> to vector<32x128xbf16>
    %69 = vector.shape_cast %68 : vector<32x128xbf16> to vector<2x16x128xbf16>
    %70 = vector.extract_strided_slice %42 {offsets = [0, 128], sizes = [32, 128], strides = [1, 1]} : vector<32x512xbf16> to vector<32x128xbf16>
    %71 = vector.shape_cast %70 : vector<32x128xbf16> to vector<2x16x128xbf16>
    "tpu.trace_start"() <{level = 10 : i32, message = "bqd,bkd->bqk"}> : () -> ()
    %cst_21 = arith.constant dense<0.000000e+00> : vector<2x16x16xf32>
    %72 = tpu.matmul %67, %69, %cst_21 {dimension_numbers = #tpu.dot_dimension_numbers<[2], [2], [1], [1], [0, 0, 0, 1, 1, 1], [0], [0]>} : vector<2x16x128xbf16>, vector<2x16x128xbf16>, vector<2x16x16xf32> -> vector<2x16x16xf32>
    "tpu.trace_stop"() : () -> ()
    %cst_22 = arith.constant 0.0883883461 : f32
    %73 = vector.broadcast %cst_22 : f32 to vector<2x16x16xf32>
    %74 = arith.mulf %72, %73 : vector<2x16x16xf32>
    %cst_23 = arith.constant dense<0xFF800000> : vector<2x16xf32>
    %75 = vector.multi_reduction <maximumf>, %74, %cst_23 [2] : vector<2x16x16xf32> to vector<2x16xf32>
    %76 = vector.shape_cast %75 : vector<2x16xf32> to vector<2x16x1xf32>
    %77 = vector.broadcast %76 : vector<2x16x1xf32> to vector<2x16x16xf32>
    %78 = arith.subf %74, %77 : vector<2x16x16xf32>
    %79 = math.exp %78 : vector<2x16x16xf32>
    %cst_24 = arith.constant dense<0.000000e+00> : vector<2x16xf32>
    %80 = vector.multi_reduction <add>, %79, %cst_24 [2] : vector<2x16x16xf32> to vector<2x16xf32>
    %81 = vector.shape_cast %80 : vector<2x16xf32> to vector<2x16x1xf32>
    %82 = tpu.reciprocal %81 {approx = true} : vector<2x16x1xf32> -> vector<2x16x1xf32>
    %83 = vector.broadcast %82 : vector<2x16x1xf32> to vector<2x16x16xf32>
    %84 = arith.mulf %79, %83 : vector<2x16x16xf32>
    %85 = arith.truncf %84 : vector<2x16x16xf32> to vector<2x16x16xbf16>
    "tpu.trace_start"() <{level = 10 : i32, message = "bqk,bkd->bqd"}> : () -> ()
    %cst_25 = arith.constant dense<0.000000e+00> : vector<2x16x128xf32>
    %86 = tpu.matmul %85, %71, %cst_25 {dimension_numbers = #tpu.dot_dimension_numbers<[2], [1], [1], [2], [0, 0, 0, 1, 1, 2], [0], [0]>} : vector<2x16x16xbf16>, vector<2x16x128xbf16>, vector<2x16x128xf32> -> vector<2x16x128xf32>
    "tpu.trace_stop"() : () -> ()
    %87 = vector.shape_cast %86 : vector<2x16x128xf32> to vector<32x128xf32>
    %c0_26 = arith.constant 0 : index
    %c128 = arith.constant 128 : index
    %88 = vector.load %arg7[%c0_26, %c128] : memref<32x512xf32, #tpu.memory_space<vmem>>, vector<32x128xf32>
    tpu.vector_store %arg7[%c0_26, %c128], %87 {strides = array<i32>} : memref<32x512xf32, #tpu.memory_space<vmem>>, vector<32x128xf32>,
    %89 = vector.extract_strided_slice %34 {offsets = [0, 256], sizes = [32, 128], strides = [1, 1]} : vector<32x512xbf16> to vector<32x128xbf16>
    %90 = vector.shape_cast %89 : vector<32x128xbf16> to vector<2x16x128xbf16>
    %91 = vector.extract_strided_slice %41 {offsets = [0, 256], sizes = [32, 128], strides = [1, 1]} : vector<32x512xbf16> to vector<32x128xbf16>
    %92 = vector.shape_cast %91 : vector<32x128xbf16> to vector<2x16x128xbf16>
    %93 = vector.extract_strided_slice %42 {offsets = [0, 256], sizes = [32, 128], strides = [1, 1]} : vector<32x512xbf16> to vector<32x128xbf16>
    %94 = vector.shape_cast %93 : vector<32x128xbf16> to vector<2x16x128xbf16>
    "tpu.trace_start"() <{level = 10 : i32, message = "bqd,bkd->bqk"}> : () -> ()
    %cst_27 = arith.constant dense<0.000000e+00> : vector<2x16x16xf32>
    %95 = tpu.matmul %90, %92, %cst_27 {dimension_numbers = #tpu.dot_dimension_numbers<[2], [2], [1], [1], [0, 0, 0, 1, 1, 1], [0], [0]>} : vector<2x16x128xbf16>, vector<2x16x128xbf16>, vector<2x16x16xf32> -> vector<2x16x16xf32>
    "tpu.trace_stop"() : () -> ()
    %cst_28 = arith.constant 0.0883883461 : f32
    %96 = vector.broadcast %cst_28 : f32 to vector<2x16x16xf32>
    %97 = arith.mulf %95, %96 : vector<2x16x16xf32>
    %cst_29 = arith.constant dense<0xFF800000> : vector<2x16xf32>
    %98 = vector.multi_reduction <maximumf>, %97, %cst_29 [2] : vector<2x16x16xf32> to vector<2x16xf32>
    %99 = vector.shape_cast %98 : vector<2x16xf32> to vector<2x16x1xf32>
    %100 = vector.broadcast %99 : vector<2x16x1xf32> to vector<2x16x16xf32>
    %101 = arith.subf %97, %100 : vector<2x16x16xf32>
    %102 = math.exp %101 : vector<2x16x16xf32>
    %cst_30 = arith.constant dense<0.000000e+00> : vector<2x16xf32>
    %103 = vector.multi_reduction <add>, %102, %cst_30 [2] : vector<2x16x16xf32> to vector<2x16xf32>
    %104 = vector.shape_cast %103 : vector<2x16xf32> to vector<2x16x1xf32>
    %105 = tpu.reciprocal %104 {approx = true} : vector<2x16x1xf32> -> vector<2x16x1xf32>
    %106 = vector.broadcast %105 : vector<2x16x1xf32> to vector<2x16x16xf32>
    %107 = arith.mulf %102, %106 : vector<2x16x16xf32>
    %108 = arith.truncf %107 : vector<2x16x16xf32> to vector<2x16x16xbf16>
    "tpu.trace_start"() <{level = 10 : i32, message = "bqk,bkd->bqd"}> : () -> ()
    %cst_31 = arith.constant dense<0.000000e+00> : vector<2x16x128xf32>
    %109 = tpu.matmul %108, %94, %cst_31 {dimension_numbers = #tpu.dot_dimension_numbers<[2], [1], [1], [2], [0, 0, 0, 1, 1, 2], [0], [0]>} : vector<2x16x16xbf16>, vector<2x16x128xbf16>, vector<2x16x128xf32> -> vector<2x16x128xf32>
    "tpu.trace_stop"() : () -> ()
    %110 = vector.shape_cast %109 : vector<2x16x128xf32> to vector<32x128xf32>
    %c0_32 = arith.constant 0 : index
    %c256 = arith.constant 256 : index
    %111 = vector.load %arg7[%c0_32, %c256] : memref<32x512xf32, #tpu.memory_space<vmem>>, vector<32x128xf32>
    tpu.vector_store %arg7[%c0_32, %c256], %110 {strides = array<i32>} : memref<32x512xf32, #tpu.memory_space<vmem>>, vector<32x128xf32>,
    %112 = vector.extract_strided_slice %34 {offsets = [0, 384], sizes = [32, 128], strides = [1, 1]} : vector<32x512xbf16> to vector<32x128xbf16>
    %113 = vector.shape_cast %112 : vector<32x128xbf16> to vector<2x16x128xbf16>
    %114 = vector.extract_strided_slice %41 {offsets = [0, 384], sizes = [32, 128], strides = [1, 1]} : vector<32x512xbf16> to vector<32x128xbf16>
    %115 = vector.shape_cast %114 : vector<32x128xbf16> to vector<2x16x128xbf16>
    %116 = vector.extract_strided_slice %42 {offsets = [0, 384], sizes = [32, 128], strides = [1, 1]} : vector<32x512xbf16> to vector<32x128xbf16>
    %117 = vector.shape_cast %116 : vector<32x128xbf16> to vector<2x16x128xbf16>
    "tpu.trace_start"() <{level = 10 : i32, message = "bqd,bkd->bqk"}> : () -> ()
    %cst_33 = arith.constant dense<0.000000e+00> : vector<2x16x16xf32>
    %118 = tpu.matmul %113, %115, %cst_33 {dimension_numbers = #tpu.dot_dimension_numbers<[2], [2], [1], [1], [0, 0, 0, 1, 1, 1], [0], [0]>} : vector<2x16x128xbf16>, vector<2x16x128xbf16>, vector<2x16x16xf32> -> vector<2x16x16xf32>
    "tpu.trace_stop"() : () -> ()
    %cst_34 = arith.constant 0.0883883461 : f32
    %119 = vector.broadcast %cst_34 : f32 to vector<2x16x16xf32>
    %120 = arith.mulf %118, %119 : vector<2x16x16xf32>
    %cst_35 = arith.constant dense<0xFF800000> : vector<2x16xf32>
    %121 = vector.multi_reduction <maximumf>, %120, %cst_35 [2] : vector<2x16x16xf32> to vector<2x16xf32>
    %122 = vector.shape_cast %121 : vector<2x16xf32> to vector<2x16x1xf32>
    %123 = vector.broadcast %122 : vector<2x16x1xf32> to vector<2x16x16xf32>
    %124 = arith.subf %120, %123 : vector<2x16x16xf32>
    %125 = math.exp %124 : vector<2x16x16xf32>
    %cst_36 = arith.constant dense<0.000000e+00> : vector<2x16xf32>
    %126 = vector.multi_reduction <add>, %125, %cst_36 [2] : vector<2x16x16xf32> to vector<2x16xf32>
    %127 = vector.shape_cast %126 : vector<2x16xf32> to vector<2x16x1xf32>
    %128 = tpu.reciprocal %127 {approx = true} : vector<2x16x1xf32> -> vector<2x16x1xf32>
    %129 = vector.broadcast %128 : vector<2x16x1xf32> to vector<2x16x16xf32>
    %130 = arith.mulf %125, %129 : vector<2x16x16xf32>
    %131 = arith.truncf %130 : vector<2x16x16xf32> to vector<2x16x16xbf16>
    "tpu.trace_start"() <{level = 10 : i32, message = "bqk,bkd->bqd"}> : () -> ()
    %cst_37 = arith.constant dense<0.000000e+00> : vector<2x16x128xf32>
    %132 = tpu.matmul %131, %117, %cst_37 {dimension_numbers = #tpu.dot_dimension_numbers<[2], [1], [1], [2], [0, 0, 0, 1, 1, 2], [0], [0]>} : vector<2x16x16xbf16>, vector<2x16x128xbf16>, vector<2x16x128xf32> -> vector<2x16x128xf32>
    "tpu.trace_stop"() : () -> ()
    %133 = vector.shape_cast %132 : vector<2x16x128xf32> to vector<32x128xf32>
    %c0_38 = arith.constant 0 : index
    %c384 = arith.constant 384 : index
    %134 = vector.load %arg7[%c0_38, %c384] : memref<32x512xf32, #tpu.memory_space<vmem>>, vector<32x128xf32>
    tpu.vector_store %arg7[%c0_38, %c384], %133 {strides = array<i32>} : memref<32x512xf32, #tpu.memory_space<vmem>>, vector<32x128xf32>,
    %c0_39 = arith.constant 0 : index
    %c0_40 = arith.constant 0 : index
    %135 = vector.load %arg7[%c0_39, %c0_40] : memref<32x512xf32, #tpu.memory_space<vmem>>, vector<32x512xf32>
    %136 = arith.truncf %135 : vector<32x512xf32> to vector<32x512xbf16>
    %c0_41 = arith.constant 0 : index
    %c0_42 = arith.constant 0 : index
    %137 = vector.load %arg5[%c0_41, %c0_42] : memref<512x128xbf16, #tpu.memory_space<vmem>>, vector<512x128xbf16>
    %cst_43 = arith.constant dense<0.000000e+00> : vector<32x128xf32>
    %138 = tpu.matmul %136, %137, %cst_43 {dimension_numbers = #tpu.dot_dimension_numbers<[1], [0], [0], [1], [0, 0, 1, 1], [], []>} : vector<32x512xbf16>, vector<512x128xbf16>, vector<32x128xf32> -> vector<32x128xf32>
    %c0_44 = arith.constant 0 : index
    %c0_45 = arith.constant 0 : index
    %139 = vector.load %arg6[%c0_44, %c0_45] : memref<1x128xf32, #tpu.memory_space<vmem>>, vector<1x128xf32>
    %140 = vector.broadcast %139 : vector<1x128xf32> to vector<32x128xf32>
    %141 = arith.addf %138, %140 : vector<32x128xf32>
    %c0_46 = arith.constant 0 : index
    %c0_47 = arith.constant 0 : index
    %142 = vector.load %arg8[%c0_46, %c0_47] : memref<32x128xf32, #tpu.memory_space<vmem>>, vector<32x128xf32>
    tpu.vector_store %arg8[%c0_46, %c0_47], %141 {strides = array<i32>} : memref<32x128xf32, #tpu.memory_space<vmem>>, vector<32x128xf32>,
    return
  }
  func.func @transform_0(%arg0: i32) -> (i32, i32) {
    %c0_i32 = arith.constant 0 : i32
    %c0_i32_0 = arith.constant 0 : i32
    return %arg0, %c0_i32 : i32, i32
  }
  func.func @transform_1(%arg0: i32) -> (i32, i32) {
    %c0_i32 = arith.constant 0 : i32
    %c0_i32_0 = arith.constant 0 : i32
    %c0_i32_1 = arith.constant 0 : i32
    return %c0_i32, %c0_i32_0 : i32, i32
  }
  func.func @transform_2(%arg0: i32) -> (i32, i32) {
    %c0_i32 = arith.constant 0 : i32
    %c0_i32_0 = arith.constant 0 : i32
    %c0_i32_1 = arith.constant 0 : i32
    return %c0_i32, %c0_i32_0 : i32, i32
  }
  func.func @transform_3(%arg0: i32) -> (i32, i32) {
    %c0_i32 = arith.constant 0 : i32
    %c0_i32_0 = arith.constant 0 : i32
    %c0_i32_1 = arith.constant 0 : i32
    return %c0_i32, %c0_i32_0 : i32, i32
  }
  func.func @transform_4(%arg0: i32) -> (i32, i32) {
    %c0_i32 = arith.constant 0 : i32
    %c0_i32_0 = arith.constant 0 : i32
    %c0_i32_1 = arith.constant 0 : i32
    return %c0_i32, %c0_i32_0 : i32, i32
  }
  func.func @transform_5(%arg0: i32) -> (i32, i32) {
    %c0_i32 = arith.constant 0 : i32
    %c0_i32_0 = arith.constant 0 : i32
    %c0_i32_1 = arith.constant 0 : i32
    return %c0_i32, %c0_i32_0 : i32, i32
  }
  func.func @transform_6(%arg0: i32) -> (i32, i32) {
    %c0_i32 = arith.constant 0 : i32
    %c0_i32_0 = arith.constant 0 : i32
    return %arg0, %c0_i32 : i32, i32
  }
  func.func @transform_7(%arg0: i32) -> (i32, i32) {
    %c0_i32 = arith.constant 0 : i32
    %c0_i32_0 = arith.constant 0 : i32
    return %arg0, %c0_i32 : i32, i32
  }
}

</mosaic_0001>

<bundles_post_ra>
// kernel: rope_multihead_attention_pallas.1
= control target key start
LH: loop header
LB: loop body
LE: loop exit
PB: predicated region body
PF: predicated region fallthrough
CT: control target
= control target key end

     0   :  { %13 = vsyncpa [#allocation3], 0  ;;  %s4687_s0 = inlined_call_operand.hbm [shape: f32[32,128], index: 0, kind: input, shape index: {}]   ;;  %s4688_s1 = inlined_call_operand.hbm [shape: bf16[128,1536], index: 1, kind: input, shape index: {}]   ;;  %s4689_s2 = inlined_call_operand.hbm [shape: f32[32,512], index: 2, kind: input, shape index: {}]   ;;  %s4690_s3 = inlined_call_operand.hbm [shape: f32[32,512], index: 3, kind: input, shape index: {}]   ;;  %s4691_s4 = inlined_call_operand.hbm [shape: bf16[512,128], index: 4, kind: input, shape index: {}]   ;;  %s4692_s5 = inlined_call_operand.vmem [shape: f32[1,128], index: 5, kind: input, shape index: {}]   ;;  %s4693_s6 = inlined_call_operand.hbm [shape: f32[32,512], index: 6, kind: output, shape index: {0}]   ;;  %s4694_s7 = inlined_call_operand.hbm [shape: f32[32,128], index: 7, kind: output, shape index: {1}]  }
   0x1   :  { %14 = vsyncpa [#allocation6], 0 }
   0x2   :  { %15 = vsyncpa [#allocation9], 0 }
   0x3   :  { %16 = vsyncpa [#allocation4], 0 }
   0x4   :  { %17 = vsyncpa [#allocation13], 0  ;;  %s3497_s24 = smov [#allocation5]   ;;  %s3333_s28 = scalar_lea.hbm %s4688_s1, 12288 }
   0x5   :  { %s35_s25 = sshll.u32 %s3497_s24, 4  ;;  %p3334_p0 = scmp.ne.s32.totalorder %s4688_s1, %s3333_s28  ;;  %s36_s25 = int_to_ptr.vmem [resolvable:$true] %s35_s25 }
   0x6   :  { %p3337_p1 = scmp.lt.u32.totalorder %s3333_s28, %s4688_s1 }
   0x8   :  { %p3339_p2 = pnand %p3337_p1, %p3334_p0 }
   0xa   :  { %3342 = shalt.err (!%p3339_p2)
}
   0xb   :  { %s3343_s10 = scalar_lea.vmem %s36_s25, 12288  ;;  %p3348_p4 = scmp.lt.s32.totalorder %s36_s25, %s36_s25 }
   0xc   :  { %p3344_p3 = scmp.ne.s32.totalorder %s36_s25, %s3343_s10  ;;  %p3349_p5 = scmp.lt.s32.totalorder %s3343_s10, %s3343_s10 }
   0xe   :  { %p3350_p6 = por %p3349_p5, %p3348_p4 }
  0x10   :  { %p3351_p7 = pnand %p3350_p6, %p3344_p3 }
  0x12   :  { %3354 = shalt.err (!%p3351_p7)
}
  0x13   :  { %s3498_s11 = smov 768   ;;  %s3499_s12 = smov 48  }
  0x14   :  { %41 = dma.hbm_to_vmem [thread:$0]  %s4688_s1, 12288, %s36_s25, [#allocation6], %s3498_s11, %s3498_s11, %s3499_s12  }
  0x15   :  { %s3500_s15 = smov [#allocation8]   ;;  %s3501_s17 = smov [#allocation2]  }
  0x16   :  { %s59_s16 = sshll.u32 %s3500_s15, 4  ;;  %s23_s18 = sshll.u32 %s3501_s17, 4  ;;  %s60_s16 = int_to_ptr.vmem [resolvable:$true] %s59_s16  ;;  %s24_s18 = int_to_ptr.vmem [resolvable:$true] %s23_s18 }
  0x17   :  { %s3355_s21 = scalar_lea.hbm %s4690_s3, 2048 }
  0x18   :  { %p3356_p8 = scmp.ne.s32.totalorder %s4690_s3, %s3355_s21  ;;  %p3359_p9 = scmp.lt.u32.totalorder %s3355_s21, %s4690_s3 }
  0x1a   :  { %p3361_p10 = pnand %p3359_p9, %p3356_p8 }
  0x1c   :  { %3364 = shalt.err (!%p3361_p10)
}
  0x1d   :  { %s3365_s1 = scalar_lea.vmem %s60_s16, 2048  ;;  %p3370_p12 = scmp.lt.s32.totalorder %s60_s16, %s60_s16 }
  0x1e   :  { %p3366_p11 = scmp.ne.s32.totalorder %s60_s16, %s3365_s1  ;;  %p3371_p13 = scmp.lt.s32.totalorder %s3365_s1, %s3365_s1 }
  0x20   :  { %p3372_p0 = por %p3371_p13, %p3370_p12 }
  0x22   :  { %p3373_p1 = pnand %p3372_p0, %p3366_p11 }
  0x24   :  { %3376 = shalt.err (!%p3373_p1)
}
  0x25   :  { %s3502_s25 = smov 512   ;;  %s3503_s27 = smov 32  }
  0x26   :  { %65 = dma.hbm_to_vmem [thread:$0]  %s4690_s3, 2048, %s60_s16, [#allocation9], %s3502_s25, %s3502_s25, %s3503_s27  }
  0x27   :  { %s3377_s9 = scalar_lea.hbm %s4687_s0, 512 }
  0x28   :  { %p3378_p2 = scmp.ne.s32.totalorder %s4687_s0, %s3377_s9  ;;  %p3381_p3 = scmp.lt.u32.totalorder %s3377_s9, %s4687_s0 }
  0x2a   :  { %p3383_p4 = pnand %p3381_p3, %p3378_p2 }
  0x2c   :  { %3386 = shalt.err (!%p3383_p4)
}
  0x2d   :  { %s3387_s14 = scalar_lea.vmem %s24_s18, 512  ;;  %p3392_p6 = scmp.lt.s32.totalorder %s24_s18, %s24_s18 }
  0x2e   :  { %p3388_p5 = scmp.ne.s32.totalorder %s24_s18, %s3387_s14  ;;  %p3393_p7 = scmp.lt.s32.totalorder %s3387_s14, %s3387_s14 }
  0x30   :  { %p3394_p8 = por %p3393_p7, %p3392_p6 }
  0x32   :  { %p3395_p9 = pnand %p3394_p8, %p3388_p5 }
  0x34   :  { %3398 = shalt.err (!%p3395_p9)
}
  0x35   :  { %s3504_s3 = smov 128   ;;  %s3505_s15 = smov 8  }
  0x36   :  { %29 = dma.hbm_to_vmem [thread:$0]  %s4687_s0, 512, %s24_s18, [#allocation3], %s3504_s3, %s3504_s3, %s3505_s15  }
  0x37   :  { %s3506_s19 = smov [#allocation7]   ;;  %s3507_s21 = smov [#allocation10]  }
  0x38   :  { %s47_s20 = sshll.u32 %s3506_s19, 4  ;;  %s71_s22 = sshll.u32 %s3507_s21, 4  ;;  %s48_s20 = int_to_ptr.vmem [resolvable:$true] %s47_s20  ;;  %s72_s22 = int_to_ptr.vmem [resolvable:$true] %s71_s22 }
  0x39   :  { %s3399_s26 = scalar_lea.hbm %s4689_s2, 2048 }
  0x3a   :  { %p3400_p10 = scmp.ne.s32.totalorder %s4689_s2, %s3399_s26  ;;  %p3403_p11 = scmp.lt.u32.totalorder %s3399_s26, %s4689_s2 }
  0x3c   :  { %p3405_p12 = pnand %p3403_p11, %p3400_p10 }
  0x3e   :  { %3408 = shalt.err (!%p3405_p12)
}
  0x3f   :  { %s3409_s0 = scalar_lea.vmem %s48_s20, 2048  ;;  %p3414_p0 = scmp.lt.s32.totalorder %s48_s20, %s48_s20 }
  0x40   :  { %p3410_p13 = scmp.ne.s32.totalorder %s48_s20, %s3409_s0  ;;  %p3415_p1 = scmp.lt.s32.totalorder %s3409_s0, %s3409_s0 }
  0x42   :  { %p3416_p2 = por %p3415_p1, %p3414_p0 }
  0x44   :  { %p3417_p3 = pnand %p3416_p2, %p3410_p13 }
  0x46   :  { %3420 = shalt.err (!%p3417_p3)
}
  0x47   :  { %53 = dma.hbm_to_vmem [thread:$0]  %s4689_s2, 2048, %s48_s20, [#allocation6], %s3502_s25, %s3502_s25, %s3503_s27  }
  0x48   :  { %s3421_s11 = scalar_lea.hbm %s4691_s4, 4096 }
  0x49   :  { %p3422_p4 = scmp.ne.s32.totalorder %s4691_s4, %s3421_s11  ;;  %p3425_p5 = scmp.lt.u32.totalorder %s3421_s11, %s4691_s4 }
  0x4b   :  { %p3427_p6 = pnand %p3425_p5, %p3422_p4 }
  0x4d   :  { %3430 = shalt.err (!%p3427_p6)
}
  0x4e   :  { %s3431_s17 = scalar_lea.vmem %s72_s22, 4096  ;;  %p3436_p8 = scmp.lt.s32.totalorder %s72_s22, %s72_s22 }
  0x4f   :  { %p3432_p7 = scmp.ne.s32.totalorder %s72_s22, %s3431_s17  ;;  %p3437_p9 = scmp.lt.s32.totalorder %s3431_s17, %s3431_s17 }
  0x51   :  { %p3438_p10 = por %p3437_p9, %p3436_p8 }
  0x53   :  { %p3439_p11 = pnand %p3438_p10, %p3432_p7 }
  0x55   :  { %3442 = shalt.err (!%p3439_p11)
}
  0x56   :  { %s3508_s2 = smov 64   ;;  %s3509_s19 = smov 4  }
  0x57   :  { %77 = dma.hbm_to_vmem [thread:$0]  %s4691_s4, 4096, %s72_s22, [#allocation9], %s3508_s2, %s3508_s2, %s3509_s19  }
  0x58   :  { %3487 = dma.done.wait [#allocation3], 512  }
  0x59   :  { %3488 = vsyncadd [#allocation3], 4294966784 }
  0x5a   :  { %3489 = dma.done.wait [#allocation6], 14336  }
  0x5b   :  { %3490 = vsyncadd [#allocation6], 4294952960 }
  0x5c   :  { %3491 = dma.done.wait [#allocation9], 6144  }
  0x5d   :  { %3492 = vsyncadd [#allocation9], 4294961152  ;;  %v3510_v0 = vmov 0   ;;  %v3093_v1 = vld [vmem:[#allocation5 + $0x4] ss:$48 sps:$4 sm:$0xff]   ;;  %v97_v32 = vld [vmem:[#allocation2 + $0x8] sm:$0xff] }
  0x5e   :  { %710 = vmatprep.mubr.bf16.mxu0 %v3510_v0  ;;  %763 = vmatprep.mubr.bf16.mxu1 %v3510_v0  ;;  %v3095_v2 = vld [vmem:[#allocation5] ss:$48 sps:$4 sm:$0xff]   ;;  %v3096_v3 = vld [vmem:[#allocation5 + $0x64] ss:$48 sps:$4 sm:$0xff]   ;;  %v3099_v5 = vld [vmem:[#allocation5 + $0xc] ss:$48 sps:$4 sm:$0xff]  }
  0x5f   :  { %678 = vmatprep.subr.bf16.mxu0 %v3093_v1  ;;  %v3098_v4 = vld [vmem:[#allocation5 + $0x60] ss:$48 sps:$4 sm:$0xff]   ;;  %v3101_v6 = vld [vmem:[#allocation5 + $0x8] ss:$48 sps:$4 sm:$0xff]   ;;  %v3102_v7 = vld [vmem:[#allocation5 + $0xc4] ss:$48 sps:$4 sm:$0xff]   ;;  %731 = vmatprep.subr.bf16.mxu1 %v3099_v5 }
  0x60   :  { %679 = vmatpush1.bf16.msra.mxu0 %v3095_v2  ;;  %732 = vmatpush1.bf16.msra.mxu1 %v3101_v6  ;;  %v3105_v8 = vld [vmem:[#allocation5 + $0x6c] ss:$48 sps:$4 sm:$0xff]   ;;  %v3107_v9 = vld [vmem:[#allocation5 + $0x68] ss:$48 sps:$4 sm:$0xff]   ;;  %v3104_v10 = vld [vmem:[#allocation5 + $0xc0] ss:$48 sps:$4 sm:$0xff]  }
  0x61   :  { %680 = vmatprep.subr.bf16.mxu0 %v3096_v3  ;;  %v3108_v11 = vld [vmem:[#allocation5 + $0x124] ss:$48 sps:$4 sm:$0xff]   ;;  %733 = vmatprep.subr.bf16.mxu1 %v3105_v8  ;;  %v3111_v12 = vld [vmem:[#allocation5 + $0xcc] ss:$48 sps:$4 sm:$0xff]   ;;  %v3113_v13 = vld [vmem:[#allocation5 + $0xc8] ss:$48 sps:$4 sm:$0xff]  }
  0x62   :  { %v3110_v14 = vld [vmem:[#allocation5 + $0x120] ss:$48 sps:$4 sm:$0xff]   ;;  %v3117_v15 = vld [vmem:[#allocation5 + $0x12c] ss:$48 sps:$4 sm:$0xff]   ;;  %v3114_v16 = vld [vmem:[#allocation5 + $0x184] ss:$48 sps:$4 sm:$0xff]  }
  0x63   :  { %v3119_v17 = vld [vmem:[#allocation5 + $0x128] ss:$48 sps:$4 sm:$0xff]   ;;  %v3116_v18 = vld [vmem:[#allocation5 + $0x180] ss:$48 sps:$4 sm:$0xff]   ;;  %v3123_v19 = vld [vmem:[#allocation5 + $0x18c] ss:$48 sps:$4 sm:$0xff]  }
  0x64   :  { %681 = vmatpush1.bf16.msra.mxu0 %v3098_v4  ;;  %734 = vmatpush1.bf16.msra.mxu1 %v3107_v9  ;;  %v3120_v20 = vld [vmem:[#allocation5 + $0x1e4] ss:$48 sps:$4 sm:$0xff]   ;;  %v3125_v21 = vld [vmem:[#allocation5 + $0x188] ss:$48 sps:$4 sm:$0xff]   ;;  %v3122_v22 = vld [vmem:[#allocation5 + $0x1e0] ss:$48 sps:$4 sm:$0xff]  }
  0x65   :  { %682 = vmatprep.subr.bf16.mxu0 %v3102_v7  ;;  %735 = vmatprep.subr.bf16.mxu1 %v3111_v12  ;;  %v3129_v23 = vld [vmem:[#allocation5 + $0x1ec] ss:$48 sps:$4 sm:$0xff]   ;;  %v3126_v24 = vld [vmem:[#allocation5 + $0x244] ss:$48 sps:$4 sm:$0xff]   ;;  %v3128_v25 = vld [vmem:[#allocation5 + $0x240] ss:$48 sps:$4 sm:$0xff]  }
  0x66   :  { %v3131_v26 = vld [vmem:[#allocation5 + $0x1e8] ss:$48 sps:$4 sm:$0xff]   ;;  %v3135_v27 = vld [vmem:[#allocation5 + $0x24c] ss:$48 sps:$4 sm:$0xff]   ;;  %v3132_v28 = vld [vmem:[#allocation5 + $0x2a4] ss:$48 sps:$4 sm:$0xff]  }
  0x67   :  { %v3134_v29 = vld [vmem:[#allocation5 + $0x2a0] ss:$48 sps:$4 sm:$0xff]   ;;  %v3137_v30 = vld [vmem:[#allocation5 + $0x248] ss:$48 sps:$4 sm:$0xff]   ;;  %v3141_v33 = vld [vmem:[#allocation5 + $0x2ac] ss:$48 sps:$4 sm:$0xff]  }
  0x68   :  { %683 = vmatpush1.bf16.msra.mxu0 %v3104_v10  ;;  %736 = vmatpush1.bf16.msra.mxu1 %v3113_v13  ;;  %v96_v31 = vld [vmem:[#allocation2] sm:$0xff]  ;;  %v3143_v37 = vld [vmem:[#allocation5 + $0x2a8] ss:$48 sps:$4 sm:$0xff]   ;;  %v3149_v38 = vld [vmem:[#allocation5 + $0x1c] ss:$48 sps:$4 sm:$0xff]   ;;  %s3511_s4 = smov 127  }
  0x69   :  { %684 = vmatprep.subr.bf16.mxu0 %v3108_v11  ;;  %737 = vmatprep.subr.bf16.mxu1 %v3117_v15  ;;  %v3140_v34 = vld [vmem:[#allocation5 + $0x14] ss:$48 sps:$4 sm:$0xff]   ;;  %v3138_v35 = vld [vmem:[#allocation5 + $0x10] ss:$48 sps:$4 sm:$0xff]   ;;  %v3628_v36 = vpack.c.bf16 %v97_v32, %v96_v31  ;;  %v3147_v41 = vld [vmem:[#allocation5 + $0x18] ss:$48 sps:$4 sm:$0xff]  }
  0x6a   :  { %v3146_v39 = vld [vmem:[#allocation5 + $0x74] ss:$48 sps:$4 sm:$0xff]   ;;  %v3144_v40 = vld [vmem:[#allocation5 + $0x70] ss:$48 sps:$4 sm:$0xff]   ;;  %v3155_v42 = vld [vmem:[#allocation5 + $0x7c] ss:$48 sps:$4 sm:$0xff]  }
  0x6b   :  { %v98_v43 = vld [vmem:[#allocation2 + $0x10] sm:$0xff]  ;;  %v99_v44 = vld [vmem:[#allocation2 + $0x18] sm:$0xff]  ;;  %s3512_s22 = smov 1   ;;  %vm3514_vm0 = vmmov 0   ;;  %vm1517_vm5 = vcmask 130048   ;;  %s3515_s23 = smov [#allocation11]  }
  0x6c   :  { %685 = vmatpush1.bf16.msra.mxu0 %v3110_v14  ;;  %738 = vmatpush1.bf16.msra.mxu1 %v3119_v17  ;;  %v3152_v45 = vld [vmem:[#allocation5 + $0xd4] ss:$48 sps:$4 sm:$0xff]   ;;  %v3153_v46 = vld [vmem:[#allocation5 + $0x78] ss:$48 sps:$4 sm:$0xff]   ;;  %v3633_v47 = vpack.c.bf16 %v99_v44, %v98_v43  ;;  %v3150_v48 = vld [vmem:[#allocation5 + $0xd0] ss:$48 sps:$4 sm:$0xff]  }
  0x6d   :  { %686 = vmatprep.subr.bf16.mxu0 %v3114_v16  ;;  %739 = vmatprep.subr.bf16.mxu1 %v3123_v19  ;;  %v3161_v49 = vld [vmem:[#allocation5 + $0xdc] ss:$48 sps:$4 sm:$0xff]   ;;  %v3158_v50 = vld [vmem:[#allocation5 + $0x134] ss:$48 sps:$4 sm:$0xff]   ;;  %v3156_v51 = vld [vmem:[#allocation5 + $0x130] ss:$48 sps:$4 sm:$0xff]  }
  0x6e   :  { %v3159_v52 = vld [vmem:[#allocation5 + $0xd8] ss:$48 sps:$4 sm:$0xff]   ;;  %v3164_v53 = vld [vmem:[#allocation5 + $0x194] ss:$48 sps:$4 sm:$0xff]   ;;  %v3167_v54 = vld [vmem:[#allocation5 + $0x13c] ss:$48 sps:$4 sm:$0xff]  }
  0x6f   :  { %v3165_v55 = vld [vmem:[#allocation5 + $0x138] ss:$48 sps:$4 sm:$0xff]   ;;  %v3162_v56 = vld [vmem:[#allocation5 + $0x190] ss:$48 sps:$4 sm:$0xff]   ;;  %v3173_v57 = vld [vmem:[#allocation5 + $0x19c] ss:$48 sps:$4 sm:$0xff]  }
  0x70   :  { %687 = vmatpush1.bf16.msra.mxu0 %v3116_v18  ;;  %740 = vmatpush1.bf16.msra.mxu1 %v3125_v21  ;;  %v3170_v58 = vld [vmem:[#allocation5 + $0x1f4] ss:$48 sps:$4 sm:$0xff]   ;;  %v3171_v59 = vld [vmem:[#allocation5 + $0x198] ss:$48 sps:$4 sm:$0xff]   ;;  %v3168_v60 = vld [vmem:[#allocation5 + $0x1f0] ss:$48 sps:$4 sm:$0xff]  }
  0x71   :  { %688 = vmatprep.subr.bf16.mxu0 %v3120_v20  ;;  %741 = vmatprep.subr.bf16.mxu1 %v3129_v23  ;;  %v3179_v61 = vld [vmem:[#allocation5 + $0x1fc] ss:$48 sps:$4 sm:$0xff]   ;;  %v3176_v62 = vld [vmem:[#allocation5 + $0x254] ss:$48 sps:$4 sm:$0xff]   ;;  %v3177_v63 = vld [vmem:[#allocation5 + $0x1f8] ss:$48 sps:$4 sm:$0xff]  }
  0x72   :  { %v3174_v1 = vld [vmem:[#allocation5 + $0x250] ss:$48 sps:$4 sm:$0xff]   ;;  %v3185_v2 = vld [vmem:[#allocation5 + $0x25c] ss:$48 sps:$4 sm:$0xff]   ;;  %v3182_v3 = vld [vmem:[#allocation5 + $0x2b4] ss:$48 sps:$4 sm:$0xff]  }
  0x73   :  { %v3183_v4 = vld [vmem:[#allocation5 + $0x258] ss:$48 sps:$4 sm:$0xff]   ;;  %v3180_v5 = vld [vmem:[#allocation5 + $0x2b0] ss:$48 sps:$4 sm:$0xff]   ;;  %v3188_v6 = vld [vmem:[#allocation5 + $0x2bc] ss:$48 sps:$4 sm:$0xff]  }
  0x74   :  { %689 = vmatpush1.bf16.msra.mxu0 %v3122_v22  ;;  %742 = vmatpush1.bf16.msra.mxu1 %v3131_v26  ;;  %v3186_v7 = vld [vmem:[#allocation5 + $0x2b8] ss:$48 sps:$4 sm:$0xff]   ;;  %v3191_v8 = vld [vmem:[#allocation5 + $0x24] ss:$48 sps:$4 sm:$0xff]   ;;  %v3189_v9 = vld [vmem:[#allocation5 + $0x20] ss:$48 sps:$4 sm:$0xff]  }
  0x75   :  { %690 = vmatprep.subr.bf16.mxu0 %v3126_v24  ;;  %743 = vmatprep.subr.bf16.mxu1 %v3135_v27  ;;  %v3194_v10 = vld [vmem:[#allocation5 + $0x84] ss:$48 sps:$4 sm:$0xff]   ;;  %v3192_v12 = vld [vmem:[#allocation5 + $0x80] ss:$48 sps:$4 sm:$0xff]   ;;  %v3204_v31 = vld [vmem:[#allocation5 + $0x28] ss:$48 sps:$4 sm:$0xff]  }
  0x76   :  { %v3197_v17 = vld [vmem:[#allocation5 + $0xe4] ss:$48 sps:$4 sm:$0xff]   ;;  %v3195_v19 = vld [vmem:[#allocation5 + $0xe0] ss:$48 sps:$4 sm:$0xff]   ;;  %v3206_v32 = vld [vmem:[#allocation5 + $0x2c] ss:$48 sps:$4 sm:$0xff]  }
  0x77   :  { %v3200_v22 = vld [vmem:[#allocation5 + $0x144] ss:$48 sps:$4 sm:$0xff]   ;;  %v3198_v24 = vld [vmem:[#allocation5 + $0x140] ss:$48 sps:$4 sm:$0xff]   ;;  %v3218_v43 = vld [vmem:[#allocation5 + $0xec] ss:$48 sps:$4 sm:$0xff]  }
  0x78   :  { %691 = vmatpush1.bf16.msra.mxu0 %v3128_v25  ;;  %744 = vmatpush1.bf16.msra.mxu1 %v3137_v30  ;;  %v3201_v27 = vld [vmem:[#allocation5 + $0x1a0] ss:$48 sps:$4 sm:$0xff]   ;;  %v3221_v44 = vld [vmem:[#allocation5 + $0x2c4] ss:$48 sps:$4 sm:$0xff]   ;;  %s2722_s24 = sshll.u32 %s3515_s23, 4  ;;  %s2723_s24 = int_to_ptr.vmem [resolvable:$true] %s2722_s24 }
  0x79   :  { %692 = vmatprep.subr.bf16.mxu0 %v3132_v28  ;;  %745 = vmatprep.subr.bf16.mxu1 %v3141_v33  ;;  %v3203_v28 = vld [vmem:[#allocation5 + $0x1a4] ss:$48 sps:$4 sm:$0xff]   ;;  %s3443_s26 = scalar_lea.vmem %s2723_s24, 2048  ;;  %p3448_p13 = scmp.lt.s32.totalorder %s2723_s24, %s2723_s24 }
  0x7a   :  { %p3444_p12 = scmp.ne.s32.totalorder %s2723_s24, %s3443_s26  ;;  %p3449_p0 = scmp.lt.s32.totalorder %s3443_s26, %s3443_s26 }
  0x7c   :  { %693 = vmatpush1.bf16.msra.mxu0 %v3134_v29  ;;  %746 = vmatpush1.bf16.msra.mxu1 %v3143_v37  ;;  %v3209_v37 = vld [vmem:[#allocation5 + $0x204] ss:$48 sps:$4 sm:$0xff]   ;;  %p3450_p1 = por %p3449_p0, %p3448_p13 }
  0x7d   :  { %784 = vmatprep.subr.bf16.mxu0 %v3140_v34  ;;  %837 = vmatprep.subr.bf16.mxu1 %v3149_v38  ;;  %v3207_v38 = vld [vmem:[#allocation5 + $0x200] ss:$48 sps:$4 sm:$0xff]  }
  0x7e   :  { %p3451_p2 = pnand %p3450_p1, %p3444_p12 }
  0x7f   :  { %711 = vmatmul.mubr.bf16.vlgmr.msra.gmra.mrb[0].mxu0 %v3628_v36  ;;  %764 = vmatmul.mubr.bf16.vlgmr.msra.gmra.mrb[0].mxu1 %v3628_v36 }
  0x80   :  { %785 = vmatpush1.bf16.msra.mxu0 %v3138_v35  ;;  %720 = vmatprep.mubr.bf16.mxu0 %v3510_v0 }
  0x81   :  { %786 = vmatprep.subr.bf16.mxu0 %v3146_v39  ;;  %838 = vmatpush1.bf16.msra.mxu1 %v3147_v41  ;;  %v3212_v39 = vld [vmem:[#allocation5 + $0x8c] ss:$48 sps:$4 sm:$0xff]   ;;  %v3210_v41 = vld [vmem:[#allocation5 + $0x88] ss:$48 sps:$4 sm:$0xff]  }
  0x82   :  { %773 = vmatprep.mubr.bf16.mxu1 %v3510_v0  ;;  %839 = vmatprep.subr.bf16.mxu1 %v3155_v42  ;;  %v3213_v42 = vld [vmem:[#allocation5 + $0x260] ss:$48 sps:$4 sm:$0xff]  }
  0x84   :  { %787 = vmatpush1.bf16.msra.mxu0 %v3144_v40  ;;  %v3215_v40 = vld [vmem:[#allocation5 + $0x264] ss:$48 sps:$4 sm:$0xff]  }
  0x85   :  { %788 = vmatprep.subr.bf16.mxu0 %v3152_v45  ;;  %840 = vmatpush1.bf16.msra.mxu1 %v3153_v46  ;;  %v3216_v45 = vld [vmem:[#allocation5 + $0xe8] ss:$48 sps:$4 sm:$0xff]   ;;  %v3219_v46 = vld [vmem:[#allocation5 + $0x2c0] ss:$48 sps:$4 sm:$0xff]  }
  0x86   :  { %841 = vmatprep.subr.bf16.mxu1 %v3161_v49  ;;  %v3222_v49 = vld [vmem:[#allocation5 + $0x148] ss:$48 sps:$4 sm:$0xff]  }
  0x87   :  { %721 = vmatmul.mubr.bf16.gmra.mrb[4].mxu0 %v3633_v47  ;;  %774 = vmatmul.mubr.bf16.gmra.mrb[4].mxu1 %v3633_v47 }
  0x88   :  { %789 = vmatpush1.bf16.msra.mxu0 %v3150_v48  ;;  %816 = vmatprep.mubr.bf16.mxu0 %v3510_v0  ;;  %v3224_v48 = vld [vmem:[#allocation5 + $0x14c] ss:$48 sps:$4 sm:$0xff]  }
  0x89   :  { %790 = vmatprep.subr.bf16.mxu0 %v3158_v50  ;;  %842 = vmatpush1.bf16.msra.mxu1 %v3159_v52  ;;  %v3227_v50 = vld [vmem:[#allocation5 + $0x1ac] ss:$48 sps:$4 sm:$0xff]   ;;  %v3225_v52 = vld [vmem:[#allocation5 + $0x1a8] ss:$48 sps:$4 sm:$0xff]  }
  0x8a   :  { %869 = vmatprep.mubr.bf16.mxu1 %v3510_v0  ;;  %843 = vmatprep.subr.bf16.mxu1 %v3167_v54 }
  0x8c   :  { %791 = vmatpush1.bf16.msra.mxu0 %v3156_v51 }
  0x8d   :  { %792 = vmatprep.subr.bf16.mxu0 %v3164_v53  ;;  %844 = vmatpush1.bf16.msra.mxu1 %v3165_v55 }
  0x8e   :  { %845 = vmatprep.subr.bf16.mxu1 %v3173_v57  ;;  %v3230_v57 = vld [vmem:[#allocation5 + $0x20c] ss:$48 sps:$4 sm:$0xff]  }
  0x90   :  { %793 = vmatpush1.bf16.msra.mxu0 %v3162_v56 }
  0x91   :  { %794 = vmatprep.subr.bf16.mxu0 %v3170_v58  ;;  %846 = vmatpush1.bf16.msra.mxu1 %v3171_v59  ;;  %v3228_v59 = vld [vmem:[#allocation5 + $0x208] ss:$48 sps:$4 sm:$0xff]  }
  0x92   :  { %847 = vmatprep.subr.bf16.mxu1 %v3179_v61 }
  0x94   :  { %795 = vmatpush1.bf16.msra.mxu0 %v3168_v60 }
  0x95   :  { %796 = vmatprep.subr.bf16.mxu0 %v3176_v62  ;;  %848 = vmatpush1.bf16.msra.mxu1 %v3177_v63  ;;  %v3233_v62 = vld [vmem:[#allocation5 + $0x26c] ss:$48 sps:$4 sm:$0xff]  }
  0x96   :  { %849 = vmatprep.subr.bf16.mxu1 %v3185_v2  ;;  %v3231_v2 = vld [vmem:[#allocation5 + $0x268] ss:$48 sps:$4 sm:$0xff]  }
  0x98   :  { %797 = vmatpush1.bf16.msra.mxu0 %v3174_v1  ;;  %v4695_v1 = vmov 0.0  }
  0x99   :  { %798 = vmatprep.subr.bf16.mxu0 %v3182_v3  ;;  %850 = vmatpush1.bf16.msra.mxu1 %v3183_v4 }
  0x9a   :  { %851 = vmatprep.subr.bf16.mxu1 %v3188_v6 }
  0x9c   :  { %799 = vmatpush1.bf16.msra.mxu0 %v3180_v5 }
  0x9d   :  { %852 = vmatpush1.bf16.msra.mxu1 %v3186_v7  ;;  %890 = vmatprep.subr.bf16.mxu0 %v3191_v8  ;;  %v3236_v7 = vld [vmem:[#allocation5 + $0x2cc] ss:$48 sps:$4 sm:$0xff]  }
  0x9e   :  { %943 = vmatprep.subr.bf16.mxu1 %v3206_v32  ;;  %v1012_v32 = vld [vmem:[#allocation8] sm:$0xff] }
  0x9f   :  { %817 = vmatmul.mubr.bf16.vlgmr.msra.gmra.mrb[8].mxu0 %v3628_v36 }
  0xa0   :  { %826 = vmatprep.mubr.bf16.mxu0 %v3510_v0  ;;  %870 = vmatmul.mubr.bf16.vlgmr.msra.gmra.mrb[8].mxu1 %v3628_v36 }
  0xa1   :  { %879 = vmatprep.mubr.bf16.mxu1 %v3510_v0  ;;  %891 = vmatpush1.bf16.msra.mxu0 %v3189_v9  ;;  %v3234_v9 = vld [vmem:[#allocation5 + $0x2c8] ss:$48 sps:$4 sm:$0xff]  }
  0xa2   :  { %892 = vmatprep.subr.bf16.mxu0 %v3194_v10  ;;  %944 = vmatpush1.bf16.msra.mxu1 %v3204_v31  ;;  %v1013_v31 = vld [vmem:[#allocation8 + $0x8] sm:$0xff] }
  0xa3   :  { %945 = vmatprep.subr.bf16.mxu1 %v3212_v39 }
  0xa5   :  { %893 = vmatpush1.bf16.msra.mxu0 %v3192_v12 }
  0xa6   :  { %894 = vmatprep.subr.bf16.mxu0 %v3197_v17  ;;  %946 = vmatpush1.bf16.msra.mxu1 %v3210_v41  ;;  %v1000_v41 = vld [vmem:[#allocation7 + $0x20] sm:$0xff] }
  0xa7   :  { %827 = vmatmul.mubr.bf16.gmra.mrb[12].mxu0 %v3633_v47  ;;  %947 = vmatprep.subr.bf16.mxu1 %v3218_v43  ;;  %v1016_v43 = vld [vmem:[#allocation8 + $0x20] sm:$0xff] }
  0xa8   :  { %922 = vmatprep.mubr.bf16.mxu0 %v3510_v0  ;;  %880 = vmatmul.mubr.bf16.gmra.mrb[12].mxu1 %v3633_v47 }
  0xa9   :  { %975 = vmatprep.mubr.bf16.mxu1 %v3510_v0  ;;  %895 = vmatpush1.bf16.msra.mxu0 %v3195_v19 }
  0xaa   :  { %896 = vmatprep.subr.bf16.mxu0 %v3200_v22  ;;  %948 = vmatpush1.bf16.msra.mxu1 %v3216_v45 }
  0xab   :  { %949 = vmatprep.subr.bf16.mxu1 %v3224_v48 }
  0xad   :  { %897 = vmatpush1.bf16.msra.mxu0 %v3198_v24 }
  0xae   :  { %898 = vmatprep.subr.bf16.mxu0 %v3203_v28  ;;  %950 = vmatpush1.bf16.msra.mxu1 %v3222_v49 }
  0xaf   :  { %951 = vmatprep.subr.bf16.mxu1 %v3227_v50 }
  0xb1   :  { %899 = vmatpush1.bf16.msra.mxu0 %v3201_v27 }
  0xb2   :  { %900 = vmatprep.subr.bf16.mxu0 %v3209_v37  ;;  %952 = vmatpush1.bf16.msra.mxu1 %v3225_v52 }
  0xb3   :  { %953 = vmatprep.subr.bf16.mxu1 %v3230_v57 }
  0xb5   :  { %901 = vmatpush1.bf16.msra.mxu0 %v3207_v38 }
  0xb6   :  { %902 = vmatprep.subr.bf16.mxu0 %v3215_v40  ;;  %954 = vmatpush1.bf16.msra.mxu1 %v3228_v59  ;;  %v996_v40 = vld [vmem:[#allocation7] sm:$0xff] }
  0xb7   :  { %955 = vmatprep.subr.bf16.mxu1 %v3233_v62 }
  0xb9   :  { %903 = vmatpush1.bf16.msra.mxu0 %v3213_v42 }
  0xba   :  { %904 = vmatprep.subr.bf16.mxu0 %v3221_v44  ;;  %956 = vmatpush1.bf16.msra.mxu1 %v3231_v2 }
  0xbb   :  { %957 = vmatprep.subr.bf16.mxu1 %v3236_v7 }
  0xbd   :  { %905 = vmatpush1.bf16.msra.mxu0 %v3219_v46 }
  0xbe   :  { %2977 = vmatprep.subr.bf16.mxu0 %v4695_v1  ;;  %958 = vmatpush1.bf16.msra.mxu1 %v3234_v9 }
  0xbf   :  { %2983 = vmatprep.subr.bf16.mxu1 %v4695_v1 }
  0xc0   :  { %923 = vmatmul.mubr.bf16.vlgmr.msra.gmra.mrb[16].mxu0 %v3628_v36 }
  0xc1   :  { %932 = vmatprep.mubr.bf16.mxu0 %v3510_v0  ;;  %976 = vmatmul.mubr.bf16.vlgmr.msra.gmra.mrb[16].mxu1 %v3628_v36  ;;  %v1028_v36 = vlaneseq }
  0xc2   :  { %985 = vmatprep.mubr.bf16.mxu1 %v3510_v0 }
  0xc3   :  { %v3814_v19 = vand.u32 127, %v1028_v36 }
  0xc5   :  { %v1037_v24 = vand.u32 1, %v3814_v19  ;;  %vm1117_vm1 = vcmp.lt.s32.totalorder %v3814_v19, 127  ;;  %vm1166_vm2 = vcmp.lt.s32.totalorder %v3814_v19, 1 }
  0xc7   :  { %vm3825_vm3 = vcmp.eq.s32.totalorder %v1037_v24, 0 }
  0xc8   :  { %933 = vmatmul.mubr.bf16.gmra.mrb[20].mxu0 %v3633_v47 }
  0xc9   :  { %2979 = vmatprep.mubr.msk.bf16.mxu0 %vm3514_vm0, %v4695_v1  ;;  %986 = vmatmul.mubr.bf16.gmra.mrb[20].mxu1 %v3633_v47 }
  0xca   :  { %2985 = vmatprep.mubr.msk.bf16.mxu1 %vm3514_vm0, %v4695_v1 }
 0x152   :  { %v3648_v11 = vpop.f32.mrb[0].mxu0  ;;  %v3660_v16 = vpop.f32.mrb[0].mxu1 }
 0x153   :  { %1085 = vrot.lane.b32.xlu0 %v3648_v11, %s3511_s4  ;;  %v3652_v13 = vpop.f32.mrb[1].mxu0  ;;  %v3662_v18 = vpop.f32.mrb[1].mxu1  ;;  %v1183_v50 = vmul.f32 %v996_v40, %v3648_v11 }
 0x154   :  { %v3654_v14 = vpop.f32.mrb[2].mxu0  ;;  %v3666_v20 = vpop.f32.mrb[2].mxu1 }
 0x155   :  { %1087 = vrot.lane.b32.xlu1 %v3654_v14, %s3511_s4  ;;  %v3658_v15 = vpop.f32.mrb[3].mxu0  ;;  %v3668_v21 = vpop.f32.mrb[3].mxu1  ;;  %v1187_v52 = vmul.f32 %v1000_v41, %v3654_v14 }
 0x157   :  { %1134 = vrot.lane.b32.xlu0 %v3648_v11, %s3512_s22 }
 0x159   :  { %1136 = vrot.lane.b32.xlu1 %v3654_v14, %s3512_s22 }
 0x15a   :  { %v3672_v23 = vpop.f32.mrb[4].mxu0  ;;  %v3684_v30 = vpop.f32.mrb[4].mxu1 }
 0x15b   :  { %1093 = vrot.lane.b32.xlu0 %v3652_v13, %s3511_s4  ;;  %v3676_v25 = vpop.f32.mrb[5].mxu0  ;;  %v3686_v33 = vpop.f32.mrb[5].mxu1 }
 0x15c   :  { %v3678_v26 = vpop.f32.mrb[6].mxu0  ;;  %4728 = vst [vmem:[#allocation19_spill] sm:$0xff] %v3686_v33  ;;  %v3690_v34 = vpop.f32.mrb[6].mxu1 }
 0x15d   :  { %1095 = vrot.lane.b32.xlu1 %v3658_v15, %s3511_s4  ;;  %v3682_v29 = vpop.f32.mrb[7].mxu0  ;;  %v3692_v35 = vpop.f32.mrb[7].mxu1 }
 0x15e   :  { %4729 = vst [vmem:[#allocation20_spill] sm:$0xff] %v3692_v35 }
 0x15f   :  { %1158 = vrot.lane.b32.xlu0 %v3662_v18, %s3512_s22 }
 0x161   :  { %1160 = vrot.lane.b32.xlu1 %v3668_v21, %s3512_s22 }
 0x163   :  { %1089 = vrot.lane.b32.xlu0 %v3672_v23, %s3511_s4 }
 0x165   :  { %1091 = vrot.lane.b32.xlu1 %v3678_v26, %s3511_s4 }
 0x167   :  { %1097 = vrot.lane.b32.xlu0 %v3676_v25, %s3511_s4 }
 0x169   :  { %1099 = vrot.lane.b32.xlu1 %v3682_v29, %s3511_s4 }
 0x172   :  { %v3706_v51 = vpop.f32.mrb[8].mxu0 }
 0x173   :  { %1255 = vrot.lane.b32.xlu0 %v3706_v51, %s3511_s4  ;;  %v3710_v53 = vpop.f32.mrb[9].mxu0  ;;  %v3718_v56 = vpop.f32.mrb[8].mxu1 }
 0x174   :  { %1263 = vrot.lane.b32.xlu1 %v3710_v53, %s3511_s4  ;;  %v3714_v54 = vpop.f32.mrb[10].mxu0  ;;  %v3720_v58 = vpop.f32.mrb[9].mxu1 }
 0x175   :  { %v3716_v55 = vpop.f32.mrb[11].mxu0  ;;  %v3724_v60 = vpop.f32.mrb[10].mxu1 }
 0x176   :  { %v3728_v61 = vpop.f32.mrb[11].mxu1 }
 0x177   :  { %1303 = vrot.lane.b32.xlu0 %v3706_v51, %s3512_s22 }
 0x178   :  { %1305 = vrot.lane.b32.xlu1 %v3714_v54, %s3512_s22 }
 0x17a   :  { %v3731_v63 = vpop.f32.mrb[12].mxu0 }
 0x17b   :  { %1327 = vrot.lane.b32.xlu0 %v3720_v58, %s3512_s22  ;;  %v3736_v3 = vpop.f32.mrb[13].mxu0  ;;  %v3744_v6 = vpop.f32.mrb[12].mxu1 }
 0x17c   :  { %1265 = vrot.lane.b32.xlu1 %v3716_v55, %s3511_s4  ;;  %v3740_v4 = vpop.f32.mrb[14].mxu0  ;;  %4730 = vst [vmem:[#allocation21_spill] sm:$0xff] %v3744_v6  ;;  %v3746_v8 = vpop.f32.mrb[13].mxu1 }
 0x17d   :  { %v3742_v5 = vpop.f32.mrb[15].mxu0  ;;  %v3750_v10 = vpop.f32.mrb[14].mxu1 }
 0x17e   :  { %4731 = vst [vmem:[#allocation22_spill] sm:$0xff] %v3750_v10  ;;  %v3754_v12 = vpop.f32.mrb[15].mxu1 }
 0x17f   :  { %1257 = vrot.lane.b32.xlu0 %v3714_v54, %s3511_s4 }
 0x180   :  { %1329 = vrot.lane.b32.xlu1 %v3728_v61, %s3512_s22 }
 0x183   :  { %1259 = vrot.lane.b32.xlu0 %v3731_v63, %s3511_s4 }
 0x184   :  { %1261 = vrot.lane.b32.xlu1 %v3740_v4, %s3511_s4 }
 0x187   :  { %1307 = vrot.lane.b32.xlu0 %v3731_v63, %s3512_s22 }
 0x188   :  { %1309 = vrot.lane.b32.xlu1 %v3740_v4, %s3512_s22 }
 0x18b   :  { %1267 = vrot.lane.b32.xlu0 %v3736_v3, %s3511_s4 }
 0x18c   :  { %1269 = vrot.lane.b32.xlu1 %v3742_v5, %s3511_s4 }
 0x18f   :  { %1331 = vrot.lane.b32.xlu0 %v3746_v8, %s3512_s22 }
 0x190   :  { %1333 = vrot.lane.b32.xlu1 %v3754_v12, %s3512_s22 }
 0x193   :  { %1138 = vrot.lane.b32.xlu0 %v3672_v23, %s3512_s22 }
 0x194   :  { %1140 = vrot.lane.b32.xlu1 %v3678_v26, %s3512_s22 }
 0x197   :  { %1162 = vrot.lane.b32.xlu0 %v3686_v33, %s3512_s22 }
 0x198   :  { %1164 = vrot.lane.b32.xlu1 %v3692_v35, %s3512_s22 }
 0x19b   :  { %1273 = vrot.lane.b32.xlu0 %v3724_v60, %s3511_s4 }
 0x19c   :  { %1271 = vrot.lane.b32.xlu1 %v3718_v56, %s3511_s4 }
 0x19f   :  { %1101 = vrot.lane.b32.xlu0 %v3660_v16, %s3511_s4 }
 0x1a0   :  { %1311 = vrot.lane.b32.xlu1 %v3710_v53, %s3512_s22 }
 0x1a3   :  { %1142 = vrot.lane.b32.xlu0 %v3652_v13, %s3512_s22 }
 0x1a4   :  { %1313 = vrot.lane.b32.xlu1 %v3716_v55, %s3512_s22 }
 0x1a7   :  { %1275 = vrot.lane.b32.xlu0 %v3744_v6, %s3511_s4 }
 0x1a8   :  { %1103 = vrot.lane.b32.xlu1 %v3666_v20, %s3511_s4 }
 0x1ac   :  { %1144 = vrot.lane.b32.xlu1 %v3658_v15, %s3512_s22 }
 0x1b0   :  { %1277 = vrot.lane.b32.xlu1 %v3750_v10, %s3511_s4 }
 0x1c5   :  { %v3808_v0 = vpop.permute.xlu0 %1085 }
 0x1c6   :  { %4732 = vst [vmem:[#allocation23_spill] sm:$0xff] %v3808_v0 }
 0x1c7   :  { %v3810_v47 = vpop.permute.xlu1 %1087 }
 0x1c8   :  { %4733 = vst [vmem:[#allocation24_spill] sm:$0xff] %v3810_v47 }
 0x1c9   :  { %v3812_v17 = vpop.permute.xlu0 %1134 }
 0x1cb   :  { %v3816_v22 = vpop.permute.xlu1 %1136 }
 0x1cd   :  { %v3819_v27 = vpop.permute.xlu0 %1093 }
 0x1ce   :  { %v1126_v38 = vsel %vm1117_vm1, %v3808_v0, %v3819_v27 }
 0x1cf   :  { %v3822_v28 = vpop.permute.xlu1 %1095 }
 0x1d0   :  { %v1127_v45 = vsel %vm1117_vm1, %v3810_v47, %v3822_v28 }
 0x1d1   :  { %v3829_v37 = vpop.permute.xlu0 %1158 }
 0x1d2   :  { %4736 = vst [vmem:[#allocation25_spill] sm:$0xff] %v3829_v37  ;;  %v1179_v39 = vsel %vm1166_vm2, %v3829_v37, %v3812_v17  ;;  %v4744_v37 = vmov 0.0  }
 0x1d3   :  { %v1199_v42 = vsel %vm3825_vm3, %v1126_v38, %v1179_v39  ;;  %v3841_v44 = vpop.permute.xlu1 %1160 }
 0x1d4   :  { %4737 = vst [vmem:[#allocation26_spill] sm:$0xff] %v3841_v44  ;;  %v1215_v46 = vmul.f32 %v1199_v42, %v1012_v32  ;;  %v1180_v48 = vsel %vm1166_vm2, %v3841_v44, %v3816_v22 }
 0x1d5   :  { %v1203_v49 = vsel %vm3825_vm3, %v1127_v45, %v1180_v48  ;;  %v3855_v7 = vpop.permute.xlu0 %1089 }
 0x1d6   :  { %v1219_v57 = vmul.f32 %v1203_v49, %v1016_v43  ;;  %v1231_v59 = vadd.f32 %v1215_v46, %v1183_v50  ;;  %4738 = vst [vmem:[#allocation27_spill] sm:$0xff] %v3855_v7 }
 0x1d7   :  { %v3857_v9 = vpop.permute.xlu1 %1091 }
 0x1d8   :  { %v1235_v62 = vadd.f32 %v1219_v57, %v1187_v52  ;;  %4739 = vst [vmem:[#allocation28_spill] sm:$0xff] %v3857_v9 }
 0x1d9   :  { %v3859_v36 = vpop.permute.xlu0 %1097 }
 0x1da   :  { %v1247_v2 = vpack.c.bf16 %v1235_v62, %v1231_v59 }
 0x1db   :  { %v3861_v24 = vpop.permute.xlu1 %1099 }
 0x1e5   :  { %v3863_v38 = vpop.permute.xlu0 %1255 }
 0x1e6   :  { %v3865_v39 = vpop.permute.xlu1 %1263 }
 0x1e7   :  { %v1295_v48 = vsel %vm1117_vm1, %v3863_v38, %v3865_v39 }
 0x1e9   :  { %v3867_v42 = vpop.permute.xlu0 %1303 }
 0x1ea   :  { %v3869_v11 = vpop.permute.xlu1 %1305 }
 0x1ed   :  { %v3871_v14 = vpop.permute.xlu0 %1327 }
 0x1ee   :  { %v1347_v45 = vsel %vm1166_vm2, %v3871_v14, %v3867_v42  ;;  %v3877_v46 = vpop.permute.xlu1 %1265 }
 0x1ef   :  { %v1367_v49 = vsel %vm3825_vm3, %v1295_v48, %v1347_v45  ;;  %v1351_v45 = vmul.f32 %v996_v40, %v3706_v51  ;;  %v1355_v48 = vmul.f32 %v1000_v41, %v3714_v54  ;;  %v1024_v41 = vld [vmem:[#allocation8 + $0x60] sm:$0xff] }
 0x1f0   :  { %v1383_v59 = vmul.f32 %v1367_v49, %v1012_v32 }
 0x1f1   :  { %v3885_v50 = vpop.permute.xlu0 %1257 }
 0x1f2   :  { %4740 = vst [vmem:[#allocation29_spill] sm:$0xff] %v3885_v50  ;;  %v1296_v52 = vsel %vm1117_vm1, %v3885_v50, %v3877_v46  ;;  %v3891_v57 = vpop.permute.xlu1 %1329  ;;  %v1399_v10 = vadd.f32 %v1383_v59, %v1351_v45  ;;  %v1008_v45 = vld [vmem:[#allocation7 + $0x60] sm:$0xff]  ;;  %v1030_v50 = vadd.s32 128, %v3814_v19 }
 0x1f3   :  { %4741 = vst [vmem:[#allocation30_spill] sm:$0xff] %v3891_v57  ;;  %v1348_v62 = vsel %vm1166_vm2, %v3891_v57, %v3869_v11 }
 0x1f4   :  { %v1371_v1 = vsel %vm3825_vm3, %v1296_v52, %v1348_v62 }
 0x1f5   :  { %v1387_v33 = vmul.f32 %v1371_v1, %v1016_v43  ;;  %v3901_v35 = vpop.permute.xlu0 %1259  ;;  %v1020_v1 = vld [vmem:[#allocation8 + $0x40] sm:$0xff] }
 0x1f6   :  { %4742 = vst [vmem:[#allocation31_spill] sm:$0xff] %v3901_v35  ;;  %v3903_v6 = vpop.permute.xlu1 %1261 }
 0x1f7   :  { %4743 = vst [vmem:[#allocation32_spill] sm:$0xff] %v3903_v6  ;;  %v1403_v44 = vadd.f32 %v1387_v33, %v1355_v48 }
 0x1f9   :  { %v3905_v32 = vpop.permute.xlu0 %1307  ;;  %v1415_v49 = vpack.c.bf16 %v1403_v44, %v1399_v10  ;;  %v1004_v44 = vld [vmem:[#allocation7 + $0x40] sm:$0xff] }
 0x1fa   :  { %v3907_v47 = vpop.permute.xlu1 %1309  ;;  %v1359_v48 = vmul.f32 %v1004_v44, %v3731_v63  ;;  %v1128_v63 = vsel %vm1117_vm1, %v3855_v7, %v3859_v36 }
 0x1fb   :  { %2978 = vmatpush3.bf16.xpose.msra.mxu0 %v1415_v49 }
 0x1fc   :  { %2989 = vmatprep.subr.bf16.mxu0 %v4744_v37 }
 0x1fd   :  { %v3910_v52 = vpop.permute.xlu0 %1267 }
 0x1fe   :  { %v3912_v51 = vpop.permute.xlu1 %1269  ;;  %v1297_v54 = vsel %vm1117_vm1, %v3901_v35, %v3910_v52 }
 0x1ff   :  { %v1298_v33 = vsel %vm1117_vm1, %v3903_v6, %v3912_v51 }
 0x201   :  { %v3922_v10 = vpop.permute.xlu0 %1331 }
 0x202   :  { %4745 = vst [vmem:[#allocation33_spill] sm:$0xff] %v3922_v10  ;;  %v1349_v40 = vsel %vm1166_vm2, %v3922_v10, %v3905_v32  ;;  %2980 = vmatmul.mubr.bf16.vlgmr.msra.gmra.mrb[24].mxu0 %v1247_v2  ;;  %v3928_v43 = vpop.permute.xlu1 %1333  ;;  %v1363_v10 = vmul.f32 %v1008_v45, %v3740_v4 }
 0x203   :  { %4746 = vst [vmem:[#allocation34_spill] sm:$0xff] %v3928_v43  ;;  %v1375_v59 = vsel %vm3825_vm3, %v1297_v54, %v1349_v40  ;;  %v1350_v62 = vsel %vm1166_vm2, %v3928_v43, %v3907_v47  ;;  %2991 = vmatprep.mubr.msk.bf16.mxu0 %vm3514_vm0, %v4744_v37 }
 0x204   :  { %v1391_v49 = vmul.f32 %v1375_v59, %v1020_v1  ;;  %v1379_v2 = vsel %vm3825_vm3, %v1298_v33, %v1350_v62  ;;  %v1191_v59 = vmul.f32 %v1004_v44, %v3672_v23 }
 0x205   :  { %v1395_v35 = vmul.f32 %v1379_v2, %v1024_v41  ;;  %v3942_v6 = vpop.permute.xlu0 %1138 }
 0x206   :  { %v1407_v54 = vadd.f32 %v1391_v49, %v1359_v48  ;;  %v3944_v40 = vpop.permute.xlu1 %1140  ;;  %v1195_v49 = vmul.f32 %v1008_v45, %v3678_v26 }
 0x207   :  { %v1411_v0 = vadd.f32 %v1395_v35, %v1363_v10  ;;  %v1129_v35 = vsel %vm1117_vm1, %v3857_v9, %v3861_v24 }
 0x209   :  { %v3946_v43 = vpop.permute.xlu0 %1162  ;;  %v1419_v57 = vpack.c.bf16 %v1411_v0, %v1407_v54 }
 0x20a   :  { %4747 = vst [vmem:[#allocation35_spill] sm:$0xff] %v3946_v43  ;;  %v1181_v4 = vsel %vm1166_vm2, %v3946_v43, %v3942_v6  ;;  %v3957_v33 = vpop.permute.xlu1 %1164 }
 0x20b   :  { %4748 = vst [vmem:[#allocation36_spill] sm:$0xff] %v3957_v33  ;;  %v1207_v0 = vsel %vm3825_vm3, %v1128_v63, %v1181_v4  ;;  %v1182_v10 = vsel %vm1166_vm2, %v3957_v33, %v3944_v40  ;;  %2984 = vmatpush3.bf16.xpose.msra.mxu1 %v1419_v57  ;;  %v1044_v63 = vand.u32 1, %v1030_v50 }
 0x20c   :  { %v1223_v62 = vmul.f32 %v1207_v0, %v1020_v1  ;;  %v1211_v48 = vsel %vm3825_vm3, %v1129_v35, %v1182_v10  ;;  %2995 = vmatprep.subr.bf16.mxu1 %v4744_v37  ;;  %v1017_v0 = vld [vmem:[#allocation8 + $0x28] sm:$0xff] }
 0x20d   :  { %v1227_v2 = vmul.f32 %v1211_v48, %v1024_v41  ;;  %v3974_v54 = vpop.permute.xlu0 %1273  ;;  %vm3980_vm4 = vcmp.eq.s32.totalorder %v1044_v63, 0 }
 0x20e   :  { %v1239_v4 = vadd.f32 %v1223_v62, %v1191_v59  ;;  %v3976_v43 = vpop.permute.xlu1 %1271  ;;  %v1001_v59 = vld [vmem:[#allocation7 + $0x28] sm:$0xff] }
 0x20f   :  { %v1243_v7 = vadd.f32 %v1227_v2, %v1195_v49  ;;  %v1291_v26 = vsel %vm1117_vm1, %v3865_v39, %v3976_v43  ;;  %v1356_v62 = vmul.f32 %v1001_v59, %v3716_v55 }
 0x211   :  { %v1251_v33 = vpack.c.bf16 %v1243_v7, %v1239_v4  ;;  %v3978_v57 = vpop.permute.xlu0 %1101  ;;  %v997_v7 = vld [vmem:[#allocation7 + $0x8] sm:$0xff] }
 0x212   :  { %v3984_v1 = vpop.permute.xlu1 %1311  ;;  %v1352_v44 = vmul.f32 %v997_v7, %v3710_v53  ;;  %v1122_v2 = vsel %vm1117_vm1, %v3819_v27, %v3978_v57 }
 0x213   :  { %v1343_v50 = vsel %vm1166_vm2, %v3867_v42, %v3984_v1  ;;  %2986 = vmatmul.mubr.bf16.vlgmr.msra.gmra.mrb[24].mxu1 %v1251_v33  ;;  %v1292_v42 = vsel %vm1117_vm1, %v3877_v46, %v3974_v54 }
 0x214   :  { %v1368_v41 = vsel %vm3980_vm4, %v1291_v26, %v1343_v50  ;;  %2997 = vmatprep.mubr.msk.bf16.mxu1 %vm3514_vm0, %v4744_v37 }
 0x215   :  { %v1384_v45 = vmul.f32 %v1368_v41, %v1013_v31  ;;  %v3999_v35 = vpop.permute.xlu0 %1142  ;;  %v1184_v41 = vmul.f32 %v997_v7, %v3652_v13 }
 0x216   :  { %v4001_v39 = vpop.permute.xlu1 %1313  ;;  %v1175_v48 = vsel %vm1166_vm2, %v3812_v17, %v3999_v35 }
 0x217   :  { %v4007_v33 = vadd.f32 %v1384_v45, %v1352_v44  ;;  %v1344_v10 = vsel %vm1166_vm2, %v3869_v11, %v4001_v39  ;;  %v1200_v63 = vsel %vm3980_vm4, %v1122_v2, %v1175_v48  ;;  %v1188_v44 = vmul.f32 %v1001_v59, %v3658_v15 }
 0x218   :  { %v1372_v53 = vsel %vm3980_vm4, %v1292_v42, %v1344_v10  ;;  %v1216_v26 = vmul.f32 %v1200_v63, %v1013_v31  ;;  %v924_v10 = vpop.f32.mrb[16].mxu0  ;;  %v4066_v63 = vpop.f32.mrb[16].mxu1 }
 0x219   :  { %v1388_v49 = vmul.f32 %v1372_v53, %v1017_v0  ;;  %v4052_v53 = vpop.f32.mrb[17].mxu0  ;;  %4751 = vst [vmem:[#allocation37_spill] sm:$0xff] %v4066_v63  ;;  %v4125_v63 = vld [vmem:[#allocation8 + $0x48] sm:$0xff] }
 0x21a   :  { %v4020_v46 = vpop.permute.xlu1 %1103  ;;  %v4046_v42 = vadd.f32 %v1216_v26, %v1184_v41  ;;  %v4068_v26 = vpop.f32.mrb[17].mxu1 }
 0x21b   :  { %v4026_v11 = vadd.f32 %v1388_v49, %v1356_v62  ;;  %v1123_v17 = vsel %vm1117_vm1, %v3822_v28, %v4020_v46  ;;  %v928_v62 = vpop.f32.mrb[18].mxu0  ;;  %4752 = vst [vmem:[#allocation38_spill] sm:$0xff] %v4068_v26 }
 0x21c   :  { %v4054_v48 = vpop.f32.mrb[19].mxu0 }
 0x21d   :  { %v934_v15 = vpop.f32.mrb[20].mxu0 }
 0x21e   :  { %v4032_v4 = vpop.permute.xlu1 %1144  ;;  %v4059_v7 = vpop.f32.mrb[21].mxu0 }
 0x21f   :  { %v1176_v27 = vsel %vm1166_vm2, %v3816_v22, %v4032_v4  ;;  %v1423_v22 = vpack.c.bf16 %v928_v62, %v924_v10 }
 0x220   :  { %v1204_v50 = vsel %vm3980_vm4, %v1123_v17, %v1176_v27  ;;  %v4070_v17 = vpop.f32.mrb[18].mxu1 }
 0x221   :  { %v1220_v45 = vmul.f32 %v1204_v50, %v1017_v0  ;;  %2990 = vmatpush3.bf16.msra.mxu0 %v1423_v22  ;;  %v938_v0 = vpop.f32.mrb[22].mxu0  ;;  %4753 = vst [vmem:[#allocation39_spill] sm:$0xff] %v4070_v17  ;;  %v4074_v50 = vpop.f32.mrb[19].mxu1 }
 0x222   :  { %3001 = vmatprep.subr.bf16.mxu0 %v4744_v37  ;;  %v1427_v59 = vpack.c.bf16 %v938_v0, %v934_v15  ;;  %v4061_v49 = vpop.f32.mrb[23].mxu0  ;;  %4754 = vst [vmem:[#allocation40_spill] sm:$0xff] %v4074_v50 }
 0x223   :  { %v4048_v31 = vadd.f32 %v1220_v45, %v1188_v44  ;;  %v4078_v44 = vpop.f32.mrb[20].mxu1 }
 0x224   :  { %2996 = vmatpush3.bf16.msra.mxu1 %v1427_v59  ;;  %4755 = vst [vmem:[#allocation41_spill] sm:$0xff] %v4078_v44  ;;  %v4080_v45 = vpop.f32.mrb[21].mxu1 }
 0x225   :  { %3007 = vmatprep.subr.bf16.mxu1 %v4744_v37  ;;  %4756 = vst [vmem:[#allocation42_spill] sm:$0xff] %v4080_v45  ;;  %v4082_v10 = vpop.f32.mrb[22].mxu1 }
 0x226   :  { %4757 = vst [vmem:[#allocation43_spill] sm:$0xff] %v4082_v10  ;;  %v4086_v22 = vpop.f32.mrb[23].mxu1 }
 0x227   :  { %4758 = vst [vmem:[#allocation44_spill] sm:$0xff] %v4086_v22 }
 0x2d5   :  { %v1465_v0 = vpop.f32.mrb[24].mxu0 }
 0x2d6   :  { %v1513_v59 = vmul.f32 0.088388346, %v1465_v0  ;;  %v2981_v27 = vpop.f32.mrb[25].mxu0 }
 0x2d7   :  { %v1468_v2 = vpop.f32.mrb[26].mxu0 }
 0x2d8   :  { %v1514_v41 = vmul.f32 0.088388346, %v1468_v2  ;;  %v2982_v13 = vpop.f32.mrb[27].mxu0  ;;  %v1518_v28 = vsel %vm1517_vm5, %v1513_v59, -inf }
 0x2d9   :  { %1519 = vmax.xlane.f32.xlu0 %v1518_v28  ;;  %v4098_v28 = vpop.permute.xlu0 %1275 }
 0x2da   :  { %v1521_v55 = vsel %vm1517_vm5, %v1514_v41, -inf }
 0x2db   :  { %1522 = vmax.xlane.f32.xlu1 %v1521_v55  ;;  %v4100_v55 = vpop.permute.xlu1 %1277 }
 0x2e6   :  { %v1506_v26 = vpop.f32.mrb[24].mxu1 }
 0x2e7   :  { %v1515_v62 = vmul.f32 0.088388346, %v1506_v26  ;;  %v2987_v50 = vpop.f32.mrb[25].mxu1 }
 0x2e8   :  { %v1509_v44 = vpop.f32.mrb[26].mxu1 }
 0x2e9   :  { %v1516_v10 = vmul.f32 0.088388346, %v1509_v44  ;;  %v2988_v9 = vpop.f32.mrb[27].mxu1  ;;  %v1524_v15 = vsel %vm1517_vm5, %v1515_v62, -inf }
 0x2ea   :  { %1525 = vmax.xlane.f32.xlu0 %v1524_v15  ;;  %v4102_v15 = vld [vmem:[#allocation8 + $0x68] sm:$0xff] }
 0x2eb   :  { %v1527_v13 = vsel %vm1517_vm5, %v1516_v10, -inf }
 0x2ec   :  { %1317 = vrot.lane.b32.xlu1 %v3742_v5, %s3512_s22 }
 0x2ee   :  { %1528 = vmax.xlane.f32.xlu0 %v1527_v13  ;;  %v1294_v13 = vsel %vm1117_vm1, %v3912_v51, %v4100_v55 }
 0x304   :  { %1315 = vrot.lane.b32.xlu0 %v3736_v3, %s3512_s22 }
 0x366   :  { %v1520_v2 = vpop.xlane.xlu0 %1519 }
 0x367   :  { %v1530_v26 = vsub.f32 %v1513_v59, %v1520_v2  ;;  %v4114_v2 = vld [vmem:[#allocation7 + $0x68] sm:$0xff] }
 0x368   :  { %v1523_v27 = vpop.xlane.xlu1 %1522 }
 0x369   :  { %v1534_v9 = vmul.f32 1.442695, %v1530_v26  ;;  %v1531_v50 = vsub.f32 %v1514_v41, %v1523_v27  ;;  %v1364_v26 = vmul.f32 %v4114_v2, %v3742_v5  ;;  %v1293_v5 = vsel %vm1117_vm1, %v3910_v52, %v4098_v28 }
 0x36b   :  { %3269 = vpow2.f32 %v1534_v9  ;;  %v1536_v44 = vmul.f32 1.442695, %v1531_v50 }
 0x36c   :  { %v4104_v0 = vpop.permute.xlu1 %1317 }
 0x36d   :  { %3271 = vpow2.f32 %v1536_v44  ;;  %v1346_v59 = vsel %vm1166_vm2, %v3907_v47, %v4104_v0 }
 0x36e   :  { %v1380_v41 = vsel %vm3980_vm4, %v1294_v13, %v1346_v59 }
 0x36f   :  { %v1396_v27 = vmul.f32 %v1380_v41, %v4102_v15  ;;  %v4137_v41 = vld [vmem:[#allocation7 + $0x48] sm:$0xff] }
 0x371   :  { %v4121_v9 = vadd.f32 %v1396_v27, %v1364_v26  ;;  %v1360_v27 = vmul.f32 %v4137_v41, %v3736_v3 }
 0x375   :  { %v3270_v50 = vpop.eup %3269 }
 0x376   :  { %v1542_v51 = vsel %vm1517_vm5, %v3270_v50, 0.0 }
 0x377   :  { %v3272_v44 = vpop.eup %3271  ;;  %v1526_v45 = vpop.xlane.xlu0 %1525  ;;  %1543 = vadd.xlane.f32.xlu1 %v1542_v51 }
 0x378   :  { %v1545_v47 = vsel %vm1517_vm5, %v3272_v44, 0.0 }
 0x379   :  { %1546 = vadd.xlane.f32.xlu0 %v1545_v47 }
 0x37b   :  { %v1529_v22 = vpop.xlane.xlu0 %1528 }
 0x37c   :  { %v1533_v17 = vsub.f32 %v1516_v10, %v1529_v22 }
 0x37f   :  { %v4127_v13 = vpop.permute.xlu0 %1315 }
 0x380   :  { %4759 = vst [vmem:[#allocation45_spill] sm:$0xff] %v4127_v13  ;;  %v1345_v59 = vsel %vm1166_vm2, %v3905_v32, %v4127_v13  ;;  %v1532_v32 = vsub.f32 %v1515_v62, %v1526_v45 }
 0x381   :  { %v1376_v26 = vsel %vm3980_vm4, %v1293_v5, %v1345_v59  ;;  %v1540_v5 = vmul.f32 1.442695, %v1533_v17 }
 0x382   :  { %v1392_v51 = vmul.f32 %v1376_v26, %v4125_v63  ;;  %v1538_v13 = vmul.f32 1.442695, %v1532_v32  ;;  %v4760_v32 = vpack.c.bf16 %v4026_v11, %v4007_v33 }
 0x384   :  { %v4144_v47 = vadd.f32 %v1392_v51, %v1360_v27  ;;  %3273 = vpow2.f32 %v1538_v13 }
 0x385   :  { %3275 = vpow2.f32 %v1540_v5  ;;  %v4761_v5 = vpack.c.bf16 %v4048_v31, %v4046_v42  ;;  %v1032_v42 = vadd.s32 384, %v3814_v19 }
 0x386   :  { %v1420_v52 = vpack.c.bf16 %v4121_v9, %v4144_v47 }
 0x388   :  { %1107 = vrot.lane.b32.xlu1 %v3690_v34, %s3511_s4 }
 0x38e   :  { %v4152_v3 = vpop.eup %3273 }
 0x38f   :  { %1105 = vrot.lane.b32.xlu0 %v3684_v30, %s3511_s4  ;;  %v4154_v59 = vpop.eup %3275  ;;  %v1548_v26 = vsel %vm1517_vm5, %v4152_v3, 0.0 }
 0x390   :  { %v1551_v27 = vsel %vm1517_vm5, %v4154_v59, 0.0 }
 0x3ac   :  { %1549 = vadd.xlane.f32.xlu1 %v1548_v26 }
 0x3ae   :  { %1552 = vadd.xlane.f32.xlu0 %v1551_v27  ;;  %v1031_v27 = vadd.s32 256, %v3814_v19 }
 0x3bd   :  { %1148 = vrot.lane.b32.xlu1 %v3682_v29, %s3512_s22 }
 0x3c1   :  { %1279 = vrot.lane.b32.xlu1 %v3720_v58, %s3511_s4 }
 0x3c4   :  { %1146 = vrot.lane.b32.xlu0 %v3676_v25, %s3512_s22 }
 0x3c5   :  { %1319 = vrot.lane.b32.xlu1 %v3718_v56, %s3512_s22 }
 0x3c8   :  { %1281 = vrot.lane.b32.xlu0 %v3728_v61, %s3511_s4 }
 0x3c9   :  { %1321 = vrot.lane.b32.xlu1 %v3724_v60, %s3512_s22 }
 0x3cc   :  { %1109 = vrot.lane.b32.xlu0 %v3662_v18, %s3511_s4 }
 0x3cd   :  { %1111 = vrot.lane.b32.xlu1 %v3668_v21, %s3511_s4 }
 0x3d0   :  { %1150 = vrot.lane.b32.xlu0 %v3660_v16, %s3512_s22 }
 0x3d1   :  { %1152 = vrot.lane.b32.xlu1 %v3666_v20, %s3512_s22 }
 0x3d4   :  { %1283 = vrot.lane.b32.xlu0 %v3746_v8, %s3511_s4 }
 0x3d5   :  { %1285 = vrot.lane.b32.xlu1 %v3754_v12, %s3511_s4 }
 0x404   :  { %v1544_v17 = vpop.xlane.xlu1 %1543 }
 0x405   :  { %3277 = vrcp.f32 %v1544_v17 }
 0x406   :  { %v1547_v45 = vpop.xlane.xlu0 %1546 }
 0x407   :  { %3279 = vrcp.f32 %v1547_v45 }
 0x408   :  { %v4200_v33 = vpop.permute.xlu1 %1107 }
 0x40a   :  { %v4202_v11 = vpop.permute.xlu0 %1105 }
 0x40f   :  { %v3278_v10 = vpop.eup %3277 }
 0x410   :  { %v1558_v22 = vmul.f32 %v3278_v10, %v3270_v50  ;;  %v4762_v50 = vpack.c.bf16 %v4054_v48, %v4052_v53  ;;  %v1125_v53 = vsel %vm1117_vm1, %v3861_v24, %v4200_v33  ;;  %v1051_v10 = vand.u32 1, %v1031_v27 }
 0x411   :  { %v3280_v62 = vpop.eup %3279 }
 0x412   :  { %v1559_v13 = vmul.f32 %v3280_v62, %v3272_v44  ;;  %v1124_v62 = vsel %vm1117_vm1, %v3859_v36, %v4202_v11  ;;  %vm4240_vm6 = vcmp.eq.s32.totalorder %v1051_v10, 0  ;;  %v1002_v10 = vld [vmem:[#allocation7 + $0x30] sm:$0xff] }
 0x414   :  { %v1562_v51 = vpack.c.bf16 %v1559_v13, %v1558_v22  ;;  %v1058_v13 = vand.u32 1, %v1032_v42 }
 0x416   :  { %2992 = vmatmul.mubr.msk.bf16.vlgmr.msra.gmra.mrb[28].mxu0 %vm1517_vm5, %v1562_v51  ;;  %vm4244_vm7 = vcmp.eq.s32.totalorder %v1058_v13, 0  ;;  %v1003_v13 = vld [vmem:[#allocation7 + $0x38] sm:$0xff] }
 0x417   :  { %3002 = vmatpush3.bf16.xpose.msra.mxu0 %v4760_v32  ;;  %3003 = vmatprep.mubr.msk.bf16.mxu0 %vm3514_vm0, %v4744_v37  ;;  %v998_v32 = vld [vmem:[#allocation7 + $0x10] sm:$0xff] }
 0x418   :  { %3013 = vmatprep.subr.bf16.mxu0 %v4744_v37 }
 0x41e   :  { %3004 = vmatmul.mubr.bf16.vlgmr.msra.gmra.mrb[32].mxu0 %v4761_v5  ;;  %v1192_v5 = vmul.f32 %v4137_v41, %v3676_v25  ;;  %v1185_v25 = vmul.f32 %v998_v32, %v3660_v16  ;;  %v1015_v41 = vld [vmem:[#allocation8 + $0x18] sm:$0xff] }
 0x41f   :  { %3014 = vmatpush3.bf16.msra.mxu0 %v4762_v50  ;;  %3015 = vmatprep.mubr.msk.bf16.mxu0 %vm3514_vm0, %v4744_v37  ;;  %v1196_v50 = vmul.f32 %v4114_v2, %v3682_v29  ;;  %v1353_v29 = vmul.f32 %v998_v32, %v3718_v56  ;;  %v1014_v2 = vld [vmem:[#allocation8 + $0x10] sm:$0xff] }
 0x420   :  { %3025 = vmatprep.subr.bf16.mxu0 %v4744_v37 }
 0x439   :  { %v1550_v44 = vpop.xlane.xlu1 %1549 }
 0x43a   :  { %3281 = vrcp.f32 %v1550_v44 }
 0x43b   :  { %v1553_v26 = vpop.xlane.xlu0 %1552 }
 0x43c   :  { %3283 = vrcp.f32 %v1553_v26 }
 0x43d   :  { %v4206_v31 = vpop.permute.xlu1 %1148 }
 0x43e   :  { %v1178_v48 = vsel %vm1166_vm2, %v3944_v40, %v4206_v31 }
 0x43f   :  { %v1212_v17 = vsel %vm3980_vm4, %v1125_v53, %v1178_v48  ;;  %v4218_v45 = vpop.permute.xlu0 %1146 }
 0x440   :  { %v1228_v22 = vmul.f32 %v1212_v17, %v4102_v15  ;;  %v1177_v24 = vsel %vm1166_vm2, %v3942_v6, %v4218_v45 }
 0x441   :  { %v1208_v40 = vsel %vm3980_vm4, %v1124_v62, %v1177_v24  ;;  %v1280_v51 = vpop.permute.xlu1 %1279 }
 0x442   :  { %v1224_v36 = vmul.f32 %v1208_v40, %v4125_v63  ;;  %v4236_v26 = vadd.f32 %v1228_v22, %v1196_v50  ;;  %v1287_v63 = vsel %vm1117_vm1, %v3976_v43, %v1280_v51  ;;  %v1299_v48 = vsel %vm1117_vm1, %v1280_v51, %v3863_v38  ;;  %v999_v43 = vld [vmem:[#allocation7 + $0x18] sm:$0xff] }
 0x443   :  { %v1282_v15 = vpop.permute.xlu0 %1281  ;;  %v1354_v40 = vmul.f32 %v999_v43, %v3720_v58 }
 0x444   :  { %v3282_v44 = vpop.eup %3281  ;;  %v4238_v27 = vadd.f32 %v1224_v36, %v1192_v5  ;;  %v1358_v5 = vmul.f32 %v1003_v13, %v3728_v61  ;;  %v1018_v36 = vld [vmem:[#allocation8 + $0x30] sm:$0xff] }
 0x445   :  { %v1320_v42 = vpop.permute.xlu1 %1319  ;;  %v1560_v62 = vmul.f32 %v3282_v44, %v4152_v3  ;;  %v1288_v3 = vsel %vm1117_vm1, %v3974_v54, %v1282_v15  ;;  %v1019_v44 = vld [vmem:[#allocation8 + $0x38] sm:$0xff] }
 0x446   :  { %v3284_v53 = vpop.eup %3283  ;;  %v1335_v17 = vsel %vm1166_vm2, %v1320_v42, %v3871_v14  ;;  %v1339_v16 = vsel %vm1166_vm2, %v3984_v1, %v1320_v42  ;;  %v1252_v56 = vpack.c.bf16 %v4236_v26, %v4238_v27  ;;  %v1357_v1 = vmul.f32 %v1002_v10, %v3724_v60  ;;  %v4768_v60 = vld [vmem:[#allocation30_spill] sm:$0xff]  ;;  %v4769_v42 = vld [vmem:[#allocation23_spill] sm:$0xff] }
 0x447   :  { %v1561_v22 = vmul.f32 %v3284_v53, %v4154_v59  ;;  %v1369_v38 = vsel %vm4240_vm6, %v1287_v63, %v1339_v16  ;;  %v1370_v24 = vsel %vm4244_vm7, %v1299_v48, %v1335_v17  ;;  %v1110_v14 = vpop.permute.xlu0 %1109  ;;  %v4767_v59 = vld [vmem:[#allocation29_spill] sm:$0xff] }
 0x448   :  { %v1385_v51 = vmul.f32 %v1369_v38, %v1014_v2  ;;  %v1386_v32 = vmul.f32 %v1370_v24, %v1015_v41  ;;  %v1300_v50 = vsel %vm1117_vm1, %v1282_v15, %v4767_v59  ;;  %v1118_v15 = vsel %vm1117_vm1, %v3978_v57, %v1110_v14  ;;  %v4771_v59 = vld [vmem:[#allocation24_spill] sm:$0xff] }
 0x449   :  { %v1322_v26 = vpop.permute.xlu1 %1321  ;;  %v1563_v27 = vpack.c.bf16 %v1561_v22, %v1560_v62  ;;  %v1130_v53 = vsel %vm1117_vm1, %v1110_v14, %v4769_v42  ;;  %v1186_v38 = vmul.f32 %v999_v43, %v3662_v18 }
 0x44a   :  { %v4279_v63 = vadd.f32 %v1385_v51, %v1353_v29  ;;  %v4281_v58 = vadd.f32 %v1386_v32, %v1354_v40  ;;  %v1336_v61 = vsel %vm1166_vm2, %v1322_v26, %v4768_v60  ;;  %v1340_v54 = vsel %vm1166_vm2, %v4001_v39, %v1322_v26  ;;  %v4770_v39 = vld [vmem:[#allocation25_spill] sm:$0xff] }
 0x44b   :  { %v1373_v29 = vsel %vm4240_vm6, %v1288_v3, %v1340_v54  ;;  %v1374_v48 = vsel %vm4244_vm7, %v1300_v50, %v1336_v61  ;;  %v1151_v17 = vpop.permute.xlu0 %1150  ;;  %2998 = vmatmul.mubr.msk.bf16.vlgmr.msra.gmra.mrb[28].mxu1 %vm1517_vm5, %v1563_v27  ;;  %v1189_v50 = vmul.f32 %v1002_v10, %v3666_v20  ;;  %v1190_v27 = vmul.f32 %v1003_v13, %v3668_v21 }
 0x44c   :  { %v1389_v16 = vmul.f32 %v1373_v29, %v1018_v36  ;;  %v1390_v62 = vmul.f32 %v1374_v48, %v1019_v44  ;;  %v1167_v22 = vsel %vm1166_vm2, %v1151_v17, %v4770_v39  ;;  %v1171_v57 = vsel %vm1166_vm2, %v3999_v35, %v1151_v17  ;;  %3008 = vmatpush3.bf16.xpose.msra.mxu1 %v1420_v52 }
 0x44d   :  { %v1201_v24 = vsel %vm4240_vm6, %v1118_v15, %v1171_v57  ;;  %v1202_v14 = vsel %vm4244_vm7, %v1130_v53, %v1167_v22  ;;  %v1112_v40 = vpop.permute.xlu1 %1111  ;;  %3009 = vmatprep.mubr.msk.bf16.mxu1 %vm3514_vm0, %v4744_v37  ;;  %3019 = vmatprep.subr.bf16.mxu1 %v4744_v37  ;;  %v4773_v54 = vpack.c.bf16 %v4061_v49, %v4059_v7 }
 0x44e   :  { %v4317_v51 = vadd.f32 %v1389_v16, %v1357_v1  ;;  %v4319_v35 = vadd.f32 %v1390_v62, %v1358_v5  ;;  %v1217_v9 = vmul.f32 %v1201_v24, %v1014_v2  ;;  %v1218_v47 = vmul.f32 %v1202_v14, %v1015_v41  ;;  %v4772_v41 = vld [vmem:[#allocation26_spill] sm:$0xff] }
 0x44f   :  { %v1119_v1 = vsel %vm1117_vm1, %v4020_v46, %v1112_v40  ;;  %v1131_v2 = vsel %vm1117_vm1, %v1112_v40, %v4771_v59  ;;  %v4774_v62 = vld [vmem:[#allocation22_spill] sm:$0xff] }
 0x450   :  { %v4321_v52 = vadd.f32 %v1217_v9, %v1185_v25  ;;  %v4323_v18 = vadd.f32 %v1218_v47, %v1186_v38  ;;  %v1417_v32 = vpack.c.bf16 %v4317_v51, %v4279_v63  ;;  %v1418_v3 = vpack.c.bf16 %v4319_v35, %v4281_v58 }
 0x451   :  { %v1153_v43 = vpop.permute.xlu1 %1152 }
 0x452   :  { %v1168_v25 = vsel %vm1166_vm2, %v1153_v43, %v4772_v41  ;;  %v1172_v5 = vsel %vm1166_vm2, %v4032_v4, %v1153_v43  ;;  %v4775_v41 = vld [vmem:[#allocation21_spill] sm:$0xff] }
 0x453   :  { %v1205_v26 = vsel %vm4240_vm6, %v1119_v1, %v1172_v5  ;;  %v1206_v46 = vsel %vm4244_vm7, %v1131_v2, %v1168_v25  ;;  %3010 = vmatmul.mubr.bf16.vlgmr.msra.gmra.mrb[32].mxu1 %v1252_v56  ;;  %v1284_v25 = vpop.permute.xlu0 %1283 }
 0x454   :  { %v1221_v60 = vmul.f32 %v1205_v26, %v1018_v36  ;;  %v1222_v61 = vmul.f32 %v1206_v46, %v1019_v44  ;;  %3020 = vmatpush3.bf16.msra.mxu1 %v4773_v54  ;;  %3021 = vmatprep.mubr.msk.bf16.mxu1 %vm3514_vm0, %v4744_v37 }
 0x455   :  { %3031 = vmatprep.subr.bf16.mxu1 %v4744_v37  ;;  %v1286_v5 = vpop.permute.xlu1 %1285 }
 0x456   :  { %v4353_v20 = vadd.f32 %v1221_v60, %v1189_v50  ;;  %v4355_v4 = vadd.f32 %v1222_v61, %v1190_v27 }
 0x458   :  { %v1249_v56 = vpack.c.bf16 %v4353_v20, %v4321_v52  ;;  %v1250_v21 = vpack.c.bf16 %v4355_v4, %v4323_v18  ;;  %v4786_v20 = vld [vmem:[#allocation28_spill] sm:$0xff]  ;;  %v4797_v4 = vld [vmem:[#allocation42_spill] sm:$0xff] }
 0x459   :  { %v4796_v18 = vld [vmem:[#allocation44_spill] sm:$0xff] }
 0x4e9   :  { %v4361_v10 = vpop.f32.mrb[28].mxu0 }
 0x4ea   :  { %1652 = vst [vmem:[#allocation11] sm:$0xff] %v4361_v10  ;;  %v2993_v7 = vpop.f32.mrb[29].mxu0 }
 0x4eb   :  { %v4364_v49 = vpop.f32.mrb[30].mxu0 }
 0x4ec   :  { %1653 = vst [vmem:[#allocation11 + $0x20] sm:$0xff] %v4364_v49  ;;  %v2994_v13 = vpop.f32.mrb[31].mxu0  ;;  %v2344_v36 = vpack.c.bf16 %v4364_v49, %v4361_v10  ;;  %v3255_v10 = vld [vmem:[#allocation10 + $0xc8] sm:$0xff]  }
 0x4ed   :  { %v3256_v49 = vld [vmem:[#allocation10 + $0x88] sm:$0xff]  }
 0x4f1   :  { %v1690_v44 = vpop.f32.mrb[32].mxu0 }
 0x4f2   :  { %v1738_v15 = vmul.f32 0.088388346, %v1690_v44  ;;  %v3005_v42 = vpop.f32.mrb[33].mxu0 }
 0x4f3   :  { %v1693_v53 = vpop.f32.mrb[34].mxu0  ;;  %v4777_v42 = vld [vmem:[#allocation19_spill] sm:$0xff] }
 0x4f4   :  { %v1739_v29 = vmul.f32 0.088388346, %v1693_v53  ;;  %v3006_v48 = vpop.f32.mrb[35].mxu0  ;;  %v1742_v17 = vsel %vm1517_vm5, %v1738_v15, -inf }
 0x4f5   :  { %1743 = vmax.xlane.f32.xlu0 %v1742_v17 }
 0x4f6   :  { %v1745_v16 = vsel %vm1517_vm5, %v1739_v29, -inf }
 0x4f7   :  { %1746 = vmax.xlane.f32.xlu1 %v1745_v16  ;;  %v4778_v16 = vld [vmem:[#allocation34_spill] sm:$0xff] }
 0x508   :  { %1325 = vrot.lane.b32.xlu1 %v4774_v62, %s3512_s22 }
 0x51e   :  { %v4373_v39 = vpop.f32.mrb[28].mxu1 }
 0x51f   :  { %1654 = vst [vmem:[#allocation11 + $0x40] sm:$0xff] %v4373_v39  ;;  %v2999_v22 = vpop.f32.mrb[29].mxu1 }
 0x520   :  { %v4376_v57 = vpop.f32.mrb[30].mxu1 }
 0x521   :  { %1655 = vst [vmem:[#allocation11 + $0x60] sm:$0xff] %v4376_v57  ;;  %v3000_v38 = vpop.f32.mrb[31].mxu1  ;;  %v2348_v24 = vpack.c.bf16 %v4376_v57, %v4373_v39  ;;  %v3259_v39 = vld [vmem:[#allocation10 + $0xd8] sm:$0xff]  }
 0x522   :  { %v3260_v57 = vld [vmem:[#allocation10 + $0x98] sm:$0xff]  }
 0x526   :  { %v1731_v14 = vpop.f32.mrb[32].mxu1 }
 0x527   :  { %v1740_v40 = vmul.f32 0.088388346, %v1731_v14  ;;  %v3011_v9 = vpop.f32.mrb[33].mxu1  ;;  %v1290_v14 = vsel %vm1117_vm1, %v4100_v55, %v1286_v5  ;;  %v1289_v55 = vsel %vm1117_vm1, %v4098_v28, %v1284_v25 }
 0x528   :  { %v1734_v47 = vpop.f32.mrb[34].mxu1 }
 0x529   :  { %v1741_v43 = vmul.f32 0.088388346, %v1734_v47  ;;  %v3012_v1 = vpop.f32.mrb[35].mxu1  ;;  %v1748_v59 = vsel %vm1517_vm5, %v1740_v40, -inf  ;;  %v4779_v47 = vld [vmem:[#allocation32_spill] sm:$0xff] }
 0x52a   :  { %1749 = vmax.xlane.f32.xlu0 %v1748_v59  ;;  %v1302_v1 = vsel %vm1117_vm1, %v1286_v5, %v4779_v47  ;;  %v4409_v59 = vld [vmem:[#allocation8 + $0x70] sm:$0xff] }
 0x52b   :  { %v1751_v2 = vsel %vm1517_vm5, %v1741_v43, -inf }
 0x52e   :  { %1752 = vmax.xlane.f32.xlu0 %v1751_v2  ;;  %v4413_v2 = vld [vmem:[#allocation8 + $0x78] sm:$0xff] }
 0x544   :  { %1323 = vrot.lane.b32.xlu0 %v4775_v41, %s3512_s22 }
 0x582   :  { %v1744_v50 = vpop.xlane.xlu0 %1743 }
 0x583   :  { %v1754_v26 = vsub.f32 %v1738_v15, %v1744_v50  ;;  %v4776_v15 = vld [vmem:[#allocation20_spill] sm:$0xff] }
 0x584   :  { %v1747_v46 = vpop.xlane.xlu1 %1746 }
 0x585   :  { %v1758_v27 = vmul.f32 1.442695, %v1754_v26  ;;  %v1755_v60 = vsub.f32 %v1739_v29, %v1747_v46  ;;  %v4780_v46 = vld [vmem:[#allocation31_spill] sm:$0xff] }
 0x586   :  { %v1301_v5 = vsel %vm1117_vm1, %v1284_v25, %v4780_v46 }
 0x587   :  { %3285 = vpow2.f32 %v1758_v27  ;;  %v1760_v61 = vmul.f32 1.442695, %v1755_v60  ;;  %v4424_v60 = vld [vmem:[#allocation8 + $0x50] sm:$0xff] }
 0x588   :  { %v1326_v53 = vpop.permute.xlu1 %1325 }
 0x589   :  { %3287 = vpow2.f32 %v1760_v61  ;;  %v1342_v17 = vsel %vm1166_vm2, %v4104_v0, %v1326_v53  ;;  %v1338_v22 = vsel %vm1166_vm2, %v1326_v53, %v4778_v16  ;;  %v4426_v61 = vld [vmem:[#allocation8 + $0x58] sm:$0xff] }
 0x58a   :  { %v1382_v50 = vsel %vm4244_vm7, %v1302_v1, %v1338_v22  ;;  %v1011_v16 = vld [vmem:[#allocation7 + $0x78] sm:$0xff] }
 0x58b   :  { %v1398_v53 = vmul.f32 %v1382_v50, %v4413_v2  ;;  %v1366_v1 = vmul.f32 %v1011_v16, %v3754_v12 }
 0x591   :  { %v4385_v54 = vpop.eup %3285 }
 0x592   :  { %v1766_v7 = vsel %vm1517_vm5, %v4385_v54, 0.0 }
 0x593   :  { %v4389_v13 = vpop.eup %3287  ;;  %1767 = vadd.xlane.f32.xlu1 %v1766_v7  ;;  %v4428_v7 = vld [vmem:[#allocation7 + $0x50] sm:$0xff] }
 0x594   :  { %v1769_v44 = vsel %vm1517_vm5, %v4389_v13, 0.0  ;;  %v1361_v22 = vmul.f32 %v4428_v7, %v4775_v41  ;;  %v4456_v41 = vadd.f32 %v1398_v53, %v1366_v1 }
 0x595   :  { %1770 = vadd.xlane.f32.xlu0 %v1769_v44  ;;  %v4430_v44 = vld [vmem:[#allocation7 + $0x58] sm:$0xff] }
 0x5a4   :  { %1115 = vrot.lane.b32.xlu1 %v4776_v15, %s3511_s4 }
 0x5ab   :  { %1113 = vrot.lane.b32.xlu0 %v4777_v42, %s3511_s4 }
 0x5b7   :  { %v1750_v29 = vpop.xlane.xlu0 %1749 }
 0x5b8   :  { %v1756_v48 = vsub.f32 %v1740_v40, %v1750_v29  ;;  %v1381_v40 = vsel %vm4240_vm6, %v1290_v14, %v1342_v17  ;;  %v4781_v29 = vld [vmem:[#allocation33_spill] sm:$0xff] }
 0x5b9   :  { %v1397_v27 = vmul.f32 %v1381_v40, %v4409_v59  ;;  %v4439_v17 = vld [vmem:[#allocation7 + $0x70] sm:$0xff] }
 0x5ba   :  { %v1762_v38 = vmul.f32 1.442695, %v1756_v48  ;;  %v4782_v48 = vld [vmem:[#allocation45_spill] sm:$0xff]  ;;  %v1365_v47 = vmul.f32 %v4439_v17, %v4774_v62 }
 0x5bb   :  { %v1753_v9 = vpop.xlane.xlu0 %1752 }
 0x5bc   :  { %3289 = vpow2.f32 %v1762_v38  ;;  %v1757_v0 = vsub.f32 %v1741_v43, %v1753_v9  ;;  %v1362_v38 = vmul.f32 %v4430_v44, %v3746_v8  ;;  %v4454_v50 = vadd.f32 %v1397_v27, %v1365_v47  ;;  %v4787_v47 = vld [vmem:[#allocation36_spill] sm:$0xff] }
 0x5be   :  { %v1764_v26 = vmul.f32 1.442695, %v1757_v0 }
 0x5bf   :  { %v1324_v43 = vpop.permute.xlu0 %1323 }
 0x5c0   :  { %3291 = vpow2.f32 %v1764_v26  ;;  %v1337_v28 = vsel %vm1166_vm2, %v1324_v43, %v4781_v29  ;;  %v1341_v25 = vsel %vm1166_vm2, %v4782_v48, %v1324_v43 }
 0x5c1   :  { %v1377_v14 = vsel %vm4240_vm6, %v1289_v55, %v1341_v25  ;;  %v1378_v9 = vsel %vm4244_vm7, %v1301_v5, %v1337_v28 }
 0x5c2   :  { %v1393_v40 = vmul.f32 %v1377_v14, %v4424_v60  ;;  %v1394_v0 = vmul.f32 %v1378_v9, %v4426_v61 }
 0x5c4   :  { %v4458_v8 = vadd.f32 %v1393_v40, %v1361_v22  ;;  %v4460_v26 = vadd.f32 %v1394_v0, %v1362_v38  ;;  %v4783_v38 = vld [vmem:[#allocation39_spill] sm:$0xff] }
 0x5c6   :  { %v4462_v55 = vpop.eup %3289  ;;  %v1421_v46 = vpack.c.bf16 %v4454_v50, %v4458_v8  ;;  %v1422_v12 = vpack.c.bf16 %v4456_v41, %v4460_v26 }
 0x5c7   :  { %v1772_v62 = vsel %vm1517_vm5, %v4462_v55, 0.0 }
 0x5c8   :  { %1773 = vadd.xlane.f32.xlu1 %v1772_v62  ;;  %v1198_v62 = vmul.f32 %v1011_v16, %v4776_v15 }
 0x5ca   :  { %v3292_v5 = vpop.eup %3291 }
 0x5cb   :  { %v1775_v27 = vsel %vm1517_vm5, %v3292_v5, 0.0 }
 0x5cc   :  { %1776 = vadd.xlane.f32.xlu0 %v1775_v27 }
 0x5d9   :  { %1156 = vrot.lane.b32.xlu1 %v3690_v34, %s3512_s22 }
 0x5e2   :  { %1154 = vrot.lane.b32.xlu0 %v3684_v30, %s3512_s22 }
 0x620   :  { %v1768_v43 = vpop.xlane.xlu1 %1767 }
 0x621   :  { %3293 = vrcp.f32 %v1768_v43 }
 0x622   :  { %v1771_v53 = vpop.xlane.xlu0 %1770 }
 0x623   :  { %3295 = vrcp.f32 %v1771_v53  ;;  %v4788_v53 = vld [vmem:[#allocation27_spill] sm:$0xff] }
 0x624   :  { %v1116_v63 = vpop.permute.xlu1 %1115 }
 0x626   :  { %v1114_v51 = vpop.permute.xlu0 %1113 }
 0x627   :  { %v1120_v43 = vsel %vm1117_vm1, %v4202_v11, %v1114_v51  ;;  %v1193_v11 = vmul.f32 %v4428_v7, %v3684_v30 }
 0x62b   :  { %v3294_v29 = vpop.eup %3293 }
 0x62c   :  { %v1782_v48 = vmul.f32 %v3294_v29, %v4385_v54  ;;  %v4784_v54 = vld [vmem:[#allocation37_spill] sm:$0xff]  ;;  %v1132_v29 = vsel %vm1117_vm1, %v1114_v51, %v4788_v53 }
 0x62d   :  { %v3296_v28 = vpop.eup %3295  ;;  %v4785_v14 = vpack.c.bf16 %v4783_v38, %v4784_v54  ;;  %v1197_v38 = vmul.f32 %v4439_v17, %v3690_v34  ;;  %v4790_v34 = vld [vmem:[#allocation43_spill] sm:$0xff] }
 0x62e   :  { %v1783_v25 = vmul.f32 %v3296_v28, %v4389_v13  ;;  %v1121_v13 = vsel %vm1117_vm1, %v4200_v33, %v1116_v63 }
 0x630   :  { %v1786_v22 = vpack.c.bf16 %v1783_v25, %v1782_v48  ;;  %v4789_v25 = vld [vmem:[#allocation35_spill] sm:$0xff] }
 0x632   :  { %3016 = vmatmul.mubr.msk.bf16.vlgmr.msra.gmra.mrb[36].mxu0 %vm1517_vm5, %v1786_v22 }
 0x633   :  { %3026 = vmatpush3.bf16.xpose.msra.mxu0 %v1417_v32  ;;  %3027 = vmatprep.mubr.msk.bf16.mxu0 %vm3514_vm0, %v4744_v37 }
 0x634   :  { %3037 = vmatprep.subr.bf16.mxu0 %v4744_v37 }
 0x63a   :  { %3028 = vmatmul.mubr.bf16.vlgmr.msra.gmra.mrb[40].mxu0 %v1249_v56  ;;  %v1133_v56 = vsel %vm1117_vm1, %v1116_v63, %v4786_v20 }
 0x63b   :  { %3038 = vmatpush3.bf16.msra.mxu0 %v4785_v14  ;;  %3039 = vmatprep.mubr.msk.bf16.mxu0 %vm3514_vm0, %v4744_v37 }
 0x63c   :  { %3049 = vmatprep.subr.bf16.mxu0 %v4744_v37 }
 0x655   :  { %v1774_v32 = vpop.xlane.xlu1 %1773 }
 0x656   :  { %3297 = vrcp.f32 %v1774_v32 }
 0x659   :  { %v1777_v9 = vpop.xlane.xlu0 %1776  ;;  %v1157_v52 = vpop.permute.xlu1 %1156 }
 0x65a   :  { %3299 = vrcp.f32 %v1777_v9  ;;  %v1170_v1 = vsel %vm1166_vm2, %v1157_v52, %v4787_v47  ;;  %v1174_v40 = vsel %vm1166_vm2, %v4206_v31, %v1157_v52 }
 0x65b   :  { %v1213_v0 = vsel %vm4240_vm6, %v1121_v13, %v1174_v40  ;;  %v1214_v33 = vsel %vm4244_vm7, %v1133_v56, %v1170_v1 }
 0x65c   :  { %v1230_v27 = vmul.f32 %v1214_v33, %v4413_v2  ;;  %v1229_v31 = vmul.f32 %v1213_v0, %v4409_v59  ;;  %v1194_v59 = vmul.f32 %v4430_v44, %v4777_v42 }
 0x65d   :  { %v1155_v28 = vpop.permute.xlu0 %1154 }
 0x65e   :  { %v4518_v48 = vadd.f32 %v1230_v27, %v1198_v62  ;;  %v1169_v22 = vsel %vm1166_vm2, %v1155_v28, %v4789_v25  ;;  %v1173_v15 = vsel %vm1166_vm2, %v4218_v45, %v1155_v28  ;;  %v1245_v14 = vadd.f32 %v1229_v31, %v1197_v38 }
 0x65f   :  { %v1209_v2 = vsel %vm4240_vm6, %v1120_v43, %v1173_v15  ;;  %v1210_v16 = vsel %vm4244_vm7, %v1132_v29, %v1169_v22 }
 0x660   :  { %v1225_v54 = vmul.f32 %v1209_v2, %v4424_v60  ;;  %v1226_v19 = vmul.f32 %v1210_v16, %v4426_v61  ;;  %v3298_v45 = vpop.eup %3297  ;;  %v4791_v60 = vld [vmem:[#allocation41_spill] sm:$0xff] }
 0x661   :  { %v1784_v51 = vmul.f32 %v3298_v45, %v4462_v55  ;;  %v4792_v61 = vpack.c.bf16 %v4790_v34, %v4791_v60 }
 0x662   :  { %v1241_v63 = vadd.f32 %v1225_v54, %v1193_v11  ;;  %v4538_v30 = vadd.f32 %v1226_v19, %v1194_v59 }
 0x664   :  { %v3300_v6 = vpop.eup %3299  ;;  %v1253_v7 = vpack.c.bf16 %v1245_v14, %v1241_v63  ;;  %v1254_v23 = vpack.c.bf16 %v4518_v48, %v4538_v30 }
 0x665   :  { %v1785_v42 = vmul.f32 %v3300_v6, %v3292_v5 }
 0x667   :  { %v1787_v44 = vpack.c.bf16 %v1785_v42, %v1784_v51 }
 0x669   :  { %3022 = vmatmul.mubr.msk.bf16.vlgmr.msra.gmra.mrb[36].mxu1 %vm1517_vm5, %v1787_v44 }
 0x66a   :  { %3032 = vmatpush3.bf16.xpose.msra.mxu1 %v1421_v46  ;;  %3033 = vmatprep.mubr.msk.bf16.mxu1 %vm3514_vm0, %v4744_v37 }
 0x66b   :  { %3043 = vmatprep.subr.bf16.mxu1 %v4744_v37 }
 0x671   :  { %3034 = vmatmul.mubr.bf16.vlgmr.msra.gmra.mrb[40].mxu1 %v1253_v7 }
 0x672   :  { %3044 = vmatpush3.bf16.msra.mxu1 %v4792_v61  ;;  %3045 = vmatprep.mubr.msk.bf16.mxu1 %vm3514_vm0, %v4744_v37 }
 0x673   :  { %3055 = vmatprep.subr.bf16.mxu1 %v4744_v37 }
 0x705   :  { %v4556_v17 = vpop.f32.mrb[36].mxu0 }
 0x706   :  { %1876 = vst [vmem:[#allocation11 + $0x8] sm:$0xff] %v4556_v17  ;;  %v3017_v50 = vpop.f32.mrb[37].mxu0 }
 0x707   :  { %v4559_v8 = vpop.f32.mrb[38].mxu0 }
 0x708   :  { %1877 = vst [vmem:[#allocation11 + $0x28] sm:$0xff] %v4559_v8  ;;  %v3018_v55 = vpop.f32.mrb[39].mxu0  ;;  %v2345_v46 = vpack.c.bf16 %v4559_v8, %v4556_v17  ;;  %v3249_v17 = vld [vmem:[#allocation10 + $0x70] sm:$0xff]  }
 0x709   :  { %v3250_v8 = vld [vmem:[#allocation10 + $0x30] sm:$0xff]  }
 0x70d   :  { %v1914_v5 = vpop.f32.mrb[40].mxu0 }
 0x70e   :  { %v1962_v32 = vmul.f32 0.088388346, %v1914_v5  ;;  %v3029_v13 = vpop.f32.mrb[41].mxu0 }
 0x70f   :  { %v1917_v9 = vpop.f32.mrb[42].mxu0 }
 0x710   :  { %v1963_v52 = vmul.f32 0.088388346, %v1917_v9  ;;  %v3030_v20 = vpop.f32.mrb[43].mxu0  ;;  %v1966_v56 = vsel %vm1517_vm5, %v1962_v32, -inf }
 0x711   :  { %1967 = vmax.xlane.f32.xlu0 %v1966_v56  ;;  %v4793_v56 = vld [vmem:[#allocation40_spill] sm:$0xff] }
 0x712   :  { %v1969_v47 = vsel %vm1517_vm5, %v1963_v52, -inf }
 0x713   :  { %1970 = vmax.xlane.f32.xlu1 %v1969_v47  ;;  %v4794_v47 = vld [vmem:[#allocation38_spill] sm:$0xff] }
 0x73c   :  { %v4566_v1 = vpop.f32.mrb[36].mxu1 }
 0x73d   :  { %1878 = vst [vmem:[#allocation11 + $0x48] sm:$0xff] %v4566_v1  ;;  %v3023_v40 = vpop.f32.mrb[37].mxu1 }
 0x73e   :  { %v4569_v0 = vpop.f32.mrb[38].mxu1  ;;  %v4795_v40 = vpack.c.bf16 %v4793_v56, %v4794_v47 }
 0x73f   :  { %1879 = vst [vmem:[#allocation11 + $0x68] sm:$0xff] %v4569_v0  ;;  %v3024_v33 = vpop.f32.mrb[39].mxu1  ;;  %v2349_v62 = vpack.c.bf16 %v4569_v0, %v4566_v1  ;;  %v3258_v1 = vld [vmem:[#allocation10 + $0x90] sm:$0xff]   ;;  %v3262_v0 = vld [vmem:[#allocation10 + $0xa0] sm:$0xff]  }
 0x744   :  { %v1955_v27 = vpop.f32.mrb[40].mxu1 }
 0x745   :  { %v1964_v43 = vmul.f32 0.088388346, %v1955_v27  ;;  %v3035_v53 = vpop.f32.mrb[41].mxu1 }
 0x746   :  { %v1958_v29 = vpop.f32.mrb[42].mxu1 }
 0x747   :  { %v1965_v28 = vmul.f32 0.088388346, %v1958_v29  ;;  %v3036_v31 = vpop.f32.mrb[43].mxu1  ;;  %v1972_v25 = vsel %vm1517_vm5, %v1964_v43, -inf }
 0x748   :  { %1973 = vmax.xlane.f32.xlu0 %v1972_v25 }
 0x749   :  { %v1975_v22 = vsel %vm1517_vm5, %v1965_v28, -inf }
 0x74c   :  { %1976 = vmax.xlane.f32.xlu0 %v1975_v22 }
 0x79e   :  { %v1968_v15 = vpop.xlane.xlu0 %1967 }
 0x79f   :  { %v1978_v11 = vsub.f32 %v1962_v32, %v1968_v15 }
 0x7a0   :  { %v1971_v2 = vpop.xlane.xlu1 %1970 }
 0x7a1   :  { %v1982_v16 = vmul.f32 1.442695, %v1978_v11  ;;  %v1979_v59 = vsub.f32 %v1963_v52, %v1971_v2 }
 0x7a3   :  { %3301 = vpow2.f32 %v1982_v16  ;;  %v1984_v38 = vmul.f32 1.442695, %v1979_v59 }
 0x7a5   :  { %3303 = vpow2.f32 %v1984_v38 }
 0x7ad   :  { %v3302_v54 = vpop.eup %3301 }
 0x7ae   :  { %v1990_v19 = vsel %vm1517_vm5, %v3302_v54, 0.0 }
 0x7af   :  { %v3304_v45 = vpop.eup %3303  ;;  %1991 = vadd.xlane.f32.xlu1 %v1990_v19 }
 0x7b0   :  { %v1993_v14 = vsel %vm1517_vm5, %v3304_v45, 0.0 }
 0x7b1   :  { %1994 = vadd.xlane.f32.xlu0 %v1993_v14 }
 0x7d5   :  { %v1974_v63 = vpop.xlane.xlu0 %1973 }
 0x7d6   :  { %v1980_v6 = vsub.f32 %v1964_v43, %v1974_v63 }
 0x7d8   :  { %v1986_v7 = vmul.f32 1.442695, %v1980_v6 }
 0x7d9   :  { %v1977_v51 = vpop.xlane.xlu0 %1976 }
 0x7da   :  { %3305 = vpow2.f32 %v1986_v7  ;;  %v1981_v42 = vsub.f32 %v1965_v28, %v1977_v51 }
 0x7dc   :  { %v1988_v44 = vmul.f32 1.442695, %v1981_v42 }
 0x7de   :  { %3307 = vpow2.f32 %v1988_v44 }
 0x7e4   :  { %v3306_v34 = vpop.eup %3305 }
 0x7e5   :  { %v1996_v60 = vsel %vm1517_vm5, %v3306_v34, 0.0 }
 0x7e6   :  { %1997 = vadd.xlane.f32.xlu1 %v1996_v60 }
 0x7e8   :  { %v3308_v61 = vpop.eup %3307 }
 0x7e9   :  { %v1999_v50 = vsel %vm1517_vm5, %v3308_v61, 0.0 }
 0x7ea   :  { %2000 = vadd.xlane.f32.xlu0 %v1999_v50 }
 0x83c   :  { %v1992_v55 = vpop.xlane.xlu1 %1991 }
 0x83d   :  { %3309 = vrcp.f32 %v1992_v55 }
 0x83e   :  { %v1995_v5 = vpop.xlane.xlu0 %1994 }
 0x83f   :  { %3311 = vrcp.f32 %v1995_v5 }
 0x847   :  { %v3310_v32 = vpop.eup %3309 }
 0x848   :  { %v2006_v9 = vmul.f32 %v3310_v32, %v3302_v54 }
 0x849   :  { %v3312_v13 = vpop.eup %3311 }
 0x84a   :  { %v2007_v52 = vmul.f32 %v3312_v13, %v3304_v45 }
 0x84c   :  { %v2010_v20 = vpack.c.bf16 %v2007_v52, %v2006_v9  ;;  %v3237_v9 = vld [vmem:[#allocation10 + $0x40] sm:$0xff]  }
 0x84e   :  { %3040 = vmatmul.mubr.msk.bf16.vlgmr.msra.gmra.mrb[44].mxu0 %vm1517_vm5, %v2010_v20 }
 0x84f   :  { %3050 = vmatpush3.bf16.xpose.msra.mxu0 %v1418_v3  ;;  %3051 = vmatprep.mubr.msk.bf16.mxu0 %vm3514_vm0, %v4744_v37 }
 0x850   :  { %3061 = vmatprep.subr.bf16.mxu0 %v4744_v37 }
 0x856   :  { %3052 = vmatmul.mubr.bf16.vlgmr.msra.gmra.mrb[48].mxu0 %v1250_v21  ;;  %v4798_v21 = vpack.c.bf16 %v4796_v18, %v4797_v4 }
 0x857   :  { %3062 = vmatpush3.bf16.msra.mxu0 %v4795_v40  ;;  %3063 = vmatprep.mubr.msk.bf16.mxu0 %vm3514_vm0, %v4744_v37 }
 0x858   :  { %2921 = vmatprep.subr.bf16.mxu0 %v3237_v9 }
 0x873   :  { %v1998_v33 = vpop.xlane.xlu1 %1997 }
 0x874   :  { %3313 = vrcp.f32 %v1998_v33 }
 0x877   :  { %v2001_v58 = vpop.xlane.xlu0 %2000 }
 0x878   :  { %3315 = vrcp.f32 %v2001_v58 }
 0x87e   :  { %v3314_v35 = vpop.eup %3313 }
 0x87f   :  { %v2008_v27 = vmul.f32 %v3314_v35, %v3306_v34 }
 0x882   :  { %v3316_v3 = vpop.eup %3315 }
 0x883   :  { %v2009_v43 = vmul.f32 %v3316_v3, %v3308_v61 }
 0x885   :  { %v2011_v53 = vpack.c.bf16 %v2009_v43, %v2008_v27  ;;  %v3253_v43 = vld [vmem:[#allocation10 + $0xc0] sm:$0xff]  }
 0x887   :  { %3046 = vmatmul.mubr.msk.bf16.vlgmr.msra.gmra.mrb[44].mxu1 %vm1517_vm5, %v2011_v53 }
 0x888   :  { %3056 = vmatpush3.bf16.xpose.msra.mxu1 %v1422_v12  ;;  %3057 = vmatprep.mubr.msk.bf16.mxu1 %vm3514_vm0, %v4744_v37 }
 0x889   :  { %3067 = vmatprep.subr.bf16.mxu1 %v4744_v37 }
 0x88f   :  { %3058 = vmatmul.mubr.bf16.vlgmr.msra.gmra.mrb[48].mxu1 %v1254_v23 }
 0x890   :  { %3068 = vmatpush3.bf16.msra.mxu1 %v4798_v21  ;;  %3069 = vmatprep.mubr.msk.bf16.mxu1 %vm3514_vm0, %v4744_v37 }
 0x891   :  { %2949 = vmatprep.subr.bf16.mxu1 %v3253_v43 }
 0x921   :  { %v4610_v29 = vpop.f32.mrb[44].mxu0 }
 0x922   :  { %2100 = vst [vmem:[#allocation11 + $0x10] sm:$0xff] %v4610_v29  ;;  %v3041_v41 = vpop.f32.mrb[45].mxu0 }
 0x923   :  { %v4613_v26 = vpop.f32.mrb[46].mxu0 }
 0x924   :  { %2101 = vst [vmem:[#allocation11 + $0x30] sm:$0xff] %v4613_v26  ;;  %v3042_v12 = vpop.f32.mrb[47].mxu0  ;;  %v2346_v48 = vpack.c.bf16 %v4613_v26, %v4610_v29 }
 0x929   :  { %v2138_v30 = vpop.f32.mrb[48].mxu0 }
 0x92a   :  { %v2186_v23 = vmul.f32 0.088388346, %v2138_v30  ;;  %v3053_v28 = vpop.f32.mrb[49].mxu0  ;;  %v3238_v30 = vld [vmem:[#allocation10] sm:$0xff]  }
 0x92b   :  { %v2141_v31 = vpop.f32.mrb[50].mxu0  ;;  %v3239_v28 = vld [vmem:[#allocation10 + $0x48] sm:$0xff]  }
 0x92c   :  { %v2187_v25 = vmul.f32 0.088388346, %v2141_v31  ;;  %v3054_v22 = vpop.f32.mrb[51].mxu0  ;;  %v2190_v37 = vsel %vm1517_vm5, %v2186_v23, -inf  ;;  %v3240_v31 = vld [vmem:[#allocation10 + $0x8] sm:$0xff]  }
 0x92d   :  { %2191 = vmax.xlane.f32.xlu1 %v2190_v37  ;;  %v3242_v22 = vld [vmem:[#allocation10 + $0x10] sm:$0xff]   ;;  %v3243_v37 = vld [vmem:[#allocation10 + $0x58] sm:$0xff]  }
 0x92e   :  { %v2193_v15 = vsel %vm1517_vm5, %v2187_v25, -inf }
 0x92f   :  { %2194 = vmax.xlane.f32.xlu0 %v2193_v15  ;;  %v3244_v15 = vld [vmem:[#allocation10 + $0x18] sm:$0xff]  }
 0x95a   :  { %v4620_v11 = vpop.f32.mrb[44].mxu1 }
 0x95b   :  { %2102 = vst [vmem:[#allocation11 + $0x50] sm:$0xff] %v4620_v11  ;;  %v3047_v2 = vpop.f32.mrb[45].mxu1 }
 0x95c   :  { %v4623_v16 = vpop.f32.mrb[46].mxu1  ;;  %v3245_v2 = vld [vmem:[#allocation10 + $0x60] sm:$0xff]  }
 0x95d   :  { %2103 = vst [vmem:[#allocation11 + $0x70] sm:$0xff] %v4623_v16  ;;  %v3048_v59 = vpop.f32.mrb[47].mxu1  ;;  %v2350_v38 = vpack.c.bf16 %v4623_v16, %v4620_v11 }
 0x95e   :  { %v3246_v59 = vld [vmem:[#allocation10 + $0x20] sm:$0xff]  }
 0x962   :  { %v2179_v54 = vpop.f32.mrb[48].mxu1 }
 0x963   :  { %v2188_v19 = vmul.f32 0.088388346, %v2179_v54  ;;  %v3059_v45 = vpop.f32.mrb[49].mxu1  ;;  %v3247_v54 = vld [vmem:[#allocation10 + $0x68] sm:$0xff]  }
 0x964   :  { %v2182_v14 = vpop.f32.mrb[50].mxu1  ;;  %v3252_v45 = vld [vmem:[#allocation10 + $0x38] sm:$0xff]  }
 0x965   :  { %v2189_v63 = vmul.f32 0.088388346, %v2182_v14  ;;  %v3060_v6 = vpop.f32.mrb[51].mxu1  ;;  %v2196_v7 = vsel %vm1517_vm5, %v2188_v19, -inf }
 0x966   :  { %2197 = vmax.xlane.f32.xlu1 %v2196_v7 }
 0x967   :  { %v2199_v51 = vsel %vm1517_vm5, %v2189_v63, -inf }
 0x968   :  { %2200 = vmax.xlane.f32.xlu0 %v2199_v51 }
 0x9ba   :  { %v2192_v42 = vpop.xlane.xlu1 %2191 }
 0x9bb   :  { %v2202_v44 = vsub.f32 %v2186_v23, %v2192_v42 }
 0x9bc   :  { %v2195_v34 = vpop.xlane.xlu0 %2194 }
 0x9bd   :  { %v2206_v60 = vmul.f32 1.442695, %v2202_v44  ;;  %v2203_v61 = vsub.f32 %v2187_v25, %v2195_v34  ;;  %v3241_v25 = vld [vmem:[#allocation10 + $0x50] sm:$0xff]   ;;  %v3254_v44 = vld [vmem:[#allocation10 + $0x80] sm:$0xff]  }
 0x9bf   :  { %3317 = vpow2.f32 %v2206_v60  ;;  %v2208_v50 = vmul.f32 1.442695, %v2203_v61  ;;  %v3264_v60 = vld [vmem:[#allocation10 + $0xa8] sm:$0xff]   ;;  %v3265_v61 = vld [vmem:[#allocation10 + $0xf0] sm:$0xff]  }
 0x9c1   :  { %3319 = vpow2.f32 %v2208_v50  ;;  %v3266_v50 = vld [vmem:[#allocation10 + $0xb0] sm:$0xff]  }
 0x9c9   :  { %v3318_v55 = vpop.eup %3317 }
 0x9ca   :  { %v2214_v5 = vsel %vm1517_vm5, %v3318_v55, 0.0 }
 0x9cb   :  { %v3320_v32 = vpop.eup %3319  ;;  %2215 = vadd.xlane.f32.xlu1 %v2214_v5  ;;  %v3268_v5 = vld [vmem:[#allocation10 + $0xb8] sm:$0xff]  }
 0x9cc   :  { %v2217_v13 = vsel %vm1517_vm5, %v3320_v32, 0.0 }
 0x9cd   :  { %2218 = vadd.xlane.f32.xlu0 %v2217_v13 }
 0x9f3   :  { %v2198_v52 = vpop.xlane.xlu1 %2197 }
 0x9f4   :  { %v2204_v20 = vsub.f32 %v2188_v19, %v2198_v52  ;;  %v3248_v19 = vld [vmem:[#allocation10 + $0x28] sm:$0xff]  }
 0x9f5   :  { %v2201_v56 = vpop.xlane.xlu0 %2200 }
 0x9f6   :  { %v2210_v47 = vmul.f32 1.442695, %v2204_v20  ;;  %v2205_v40 = vsub.f32 %v2189_v63, %v2201_v56 }
 0x9f8   :  { %3321 = vpow2.f32 %v2210_v47  ;;  %v2212_v33 = vmul.f32 1.442695, %v2205_v40 }
 0x9fa   :  { %3323 = vpow2.f32 %v2212_v33 }
 0xa02   :  { %v3322_v58 = vpop.eup %3321 }
 0xa03   :  { %v2220_v35 = vsel %vm1517_vm5, %v3322_v58, 0.0 }
 0xa04   :  { %v3324_v3 = vpop.eup %3323  ;;  %2221 = vadd.xlane.f32.xlu1 %v2220_v35 }
 0xa05   :  { %v2223_v27 = vsel %vm1517_vm5, %v3324_v3, 0.0 }
 0xa06   :  { %2224 = vadd.xlane.f32.xlu0 %v2223_v27 }
 0xa58   :  { %v2216_v53 = vpop.xlane.xlu1 %2215 }
 0xa59   :  { %3325 = vrcp.f32 %v2216_v53 }
 0xa5a   :  { %v2219_v18 = vpop.xlane.xlu0 %2218 }
 0xa5b   :  { %3327 = vrcp.f32 %v2219_v18 }
 0xa63   :  { %v3326_v4 = vpop.eup %3325 }
 0xa64   :  { %v2230_v41 = vmul.f32 %v3326_v4, %v3318_v55  ;;  %v3267_v55 = vld [vmem:[#allocation10 + $0xf8] sm:$0xff]  }
 0xa65   :  { %v3328_v21 = vpop.eup %3327 }
 0xa66   :  { %v2231_v12 = vmul.f32 %v3328_v21, %v3320_v32 }
 0xa68   :  { %v2234_v23 = vpack.c.bf16 %v2231_v12, %v2230_v41 }
 0xa6a   :  { %3064 = vmatmul.mubr.msk.bf16.vlgmr.msra.gmra.mrb[52].mxu0 %vm1517_vm5, %v2234_v23 }
 0xa6b   :  { %2922 = vmatpush3.bf16.msra.mxu0 %v3238_v30  ;;  %2647 = vmatprep.mubr.bf16.mxu0 %v2345_v46  ;;  %v3251_v46 = vld [vmem:[#allocation10 + $0x78] sm:$0xff]  }
 0xa6c   :  { %2923 = vmatprep.subr.bf16.mxu0 %v3239_v28 }
 0xa6f   :  { %2924 = vmatpush3.bf16.msra.mxu0 %v3240_v31 }
 0xa70   :  { %2925 = vmatprep.subr.bf16.mxu0 %v3241_v25 }
 0xa73   :  { %2926 = vmatpush3.bf16.msra.mxu0 %v3242_v22 }
 0xa74   :  { %2927 = vmatprep.subr.bf16.mxu0 %v3243_v37 }
 0xa77   :  { %2928 = vmatpush3.bf16.msra.mxu0 %v3244_v15 }
 0xa78   :  { %2929 = vmatprep.subr.bf16.mxu0 %v3245_v2 }
 0xa7b   :  { %2930 = vmatpush3.bf16.msra.mxu0 %v3246_v59 }
 0xa7c   :  { %2931 = vmatprep.subr.bf16.mxu0 %v3247_v54 }
 0xa7f   :  { %2932 = vmatpush3.bf16.msra.mxu0 %v3248_v19 }
 0xa80   :  { %2933 = vmatprep.subr.bf16.mxu0 %v3249_v17 }
 0xa83   :  { %2934 = vmatpush3.bf16.msra.mxu0 %v3250_v8 }
 0xa84   :  { %2935 = vmatprep.subr.bf16.mxu0 %v3251_v46 }
 0xa87   :  { %2936 = vmatpush3.bf16.msra.mxu0 %v3252_v45 }
 0xa8a   :  { %2648 = vmatmul.mubr.bf16.vlgmr.msra.gmra.mrb[56].mxu0 %v2344_v36  ;;  %v3257_v36 = vld [vmem:[#allocation10 + $0xd0] sm:$0xff]  }
 0xa8b   :  { %2655 = vmatprep.mubr.bf16.mxu0 %v2349_v62  ;;  %v3263_v62 = vld [vmem:[#allocation10 + $0xe8] sm:$0xff]  }
 0xa91   :  { %v2222_v14 = vpop.xlane.xlu1 %2221 }
 0xa92   :  { %3329 = vrcp.f32 %v2222_v14  ;;  %2656 = vmatmul.mubr.bf16.gmra.mrb[60].mxu0 %v2348_v24  ;;  %v3261_v24 = vld [vmem:[#allocation10 + $0xe0] sm:$0xff]  }
 0xa93   :  { %v2225_v63 = vpop.xlane.xlu0 %2224 }
 0xa94   :  { %3331 = vrcp.f32 %v2225_v63 }
 0xa9c   :  { %v3330_v6 = vpop.eup %3329 }
 0xa9d   :  { %v2232_v51 = vmul.f32 %v3330_v6, %v3322_v58 }
 0xa9e   :  { %v3332_v7 = vpop.eup %3331 }
 0xa9f   :  { %v2233_v42 = vmul.f32 %v3332_v7, %v3324_v3 }
 0xaa1   :  { %v2235_v34 = vpack.c.bf16 %v2233_v42, %v2232_v51 }
 0xaa3   :  { %3070 = vmatmul.mubr.msk.bf16.vlgmr.msra.gmra.mrb[52].mxu1 %vm1517_vm5, %v2235_v34 }
 0xaa4   :  { %2950 = vmatpush3.bf16.msra.mxu1 %v3254_v44 }
 0xaa5   :  { %2951 = vmatprep.subr.bf16.mxu1 %v3255_v10 }
 0xaa8   :  { %2952 = vmatpush3.bf16.msra.mxu1 %v3256_v49 }
 0xaa9   :  { %2953 = vmatprep.subr.bf16.mxu1 %v3257_v36 }
 0xaac   :  { %2954 = vmatpush3.bf16.msra.mxu1 %v3258_v1 }
 0xaad   :  { %2955 = vmatprep.subr.bf16.mxu1 %v3259_v39 }
 0xab0   :  { %2956 = vmatpush3.bf16.msra.mxu1 %v3260_v57 }
 0xab1   :  { %2957 = vmatprep.subr.bf16.mxu1 %v3261_v24 }
 0xab4   :  { %2958 = vmatpush3.bf16.msra.mxu1 %v3262_v0 }
 0xab5   :  { %2959 = vmatprep.subr.bf16.mxu1 %v3263_v62 }
 0xab8   :  { %2960 = vmatpush3.bf16.msra.mxu1 %v3264_v60 }
 0xab9   :  { %2961 = vmatprep.subr.bf16.mxu1 %v3265_v61 }
 0xabc   :  { %2962 = vmatpush3.bf16.msra.mxu1 %v3266_v50 }
 0xabd   :  { %2963 = vmatprep.subr.bf16.mxu1 %v3267_v55 }
 0xac0   :  { %2964 = vmatpush3.bf16.msra.mxu1 %v3268_v5 }
 0xb3d   :  { %v2273_v32 = vpop.f32.mrb[52].mxu0 }
 0xb3e   :  { %2324 = vst [vmem:[#allocation11 + $0x18] sm:$0xff] %v2273_v32  ;;  %v3065_v13 = vpop.f32.mrb[53].mxu0 }
 0xb3f   :  { %v2276_v9 = vpop.f32.mrb[54].mxu0 }
 0xb40   :  { %2325 = vst [vmem:[#allocation11 + $0x38] sm:$0xff] %v2276_v9  ;;  %v3066_v52 = vpop.f32.mrb[55].mxu0  ;;  %v2347_v20 = vpack.c.bf16 %v2276_v9, %v2273_v32 }
 0xb42   :  { %2696 = vmatprep.mubr.bf16.mxu1 %v2347_v20 }
 0xb43   :  { %2697 = vmatmul.mubr.bf16.vlgmr.msra.gmra.mrb[56].mxu1 %v2346_v48 }
 0xb5d   :  { %v2937_v56 = vpop.f32.mrb[56].mxu0 }
 0xb5e   :  { %v2938_v47 = vpop.f32.mrb[57].mxu0 }
 0xb5f   :  { %v2939_v40 = vadd.f32 %v2938_v47, %v2937_v56  ;;  %v2940_v33 = vpop.f32.mrb[58].mxu0 }
 0xb60   :  { %v2941_v58 = vpop.f32.mrb[59].mxu0 }
 0xb61   :  { %v2942_v35 = vadd.f32 %v2941_v58, %v2940_v33 }
 0xb65   :  { %v2943_v3 = vpop.f32.mrb[60].mxu0 }
 0xb66   :  { %v2944_v27 = vpop.f32.mrb[61].mxu0 }
 0xb67   :  { %v2945_v43 = vadd.f32 %v2944_v27, %v2943_v3  ;;  %v2946_v53 = vpop.f32.mrb[62].mxu0 }
 0xb68   :  { %v2947_v18 = vpop.f32.mrb[63].mxu0 }
 0xb69   :  { %v2948_v4 = vadd.f32 %v2947_v18, %v2946_v53 }
 0xb76   :  { %v2317_v21 = vpop.f32.mrb[52].mxu1 }
 0xb77   :  { %2326 = vst [vmem:[#allocation11 + $0x58] sm:$0xff] %v2317_v21  ;;  %v3071_v41 = vpop.f32.mrb[53].mxu1 }
 0xb78   :  { %v2320_v12 = vpop.f32.mrb[54].mxu1 }
 0xb79   :  { %2327 = vst [vmem:[#allocation11 + $0x78] sm:$0xff] %v2320_v12  ;;  %v3072_v30 = vpop.f32.mrb[55].mxu1  ;;  %v2351_v29 = vpack.c.bf16 %v2320_v12, %v2317_v21 }
 0xb7b   :  { %2704 = vmatprep.mubr.bf16.mxu1 %v2351_v29 }
 0xb7c   :  { %2705 = vmatmul.mubr.bf16.gmra.mrb[60].mxu1 %v2350_v38 }
 0xb7d   :  { %3454 = shalt.err (!%p3451_p2)
}
 0xb7e   :  { %s3455_s29 = scalar_lea.hbm %s4693_s6, 2048 }
 0xb7f   :  { %p3456_p3 = scmp.ne.s32.totalorder %s4693_s6, %s3455_s29  ;;  %p3459_p4 = scmp.lt.u32.totalorder %s3455_s29, %s4693_s6 }
 0xb81   :  { %p3461_p5 = pnand %p3459_p4, %p3456_p3 }
 0xb83   :  { %3464 = shalt.err (!%p3461_p5)
}
 0xb84   :  { %2728 = dma.vmem_to_hbm [thread:$0]  %s2723_s24, 2048, %s4693_s6, [#allocation4], %s3502_s25, %s3502_s25, %s3503_s27  }
 0xb85   :  { %v2856_v26 = vld [vmem:[%s4692_s5] ss:$0 sm:$0xff]  ;;  %s3516_s6 = smov [#allocation12]  }
 0xb86   :  { %v2650_v16 = vadd.f32 %v2939_v40, %v2856_v26  ;;  %v2653_v31 = vadd.f32 %v2942_v35, %v2856_v26  ;;  %v2658_v59 = vadd.f32 %v2945_v43, %v2856_v26  ;;  %s2734_s5 = sshll.u32 %s3516_s6, 4  ;;  %v2661_v8 = vadd.f32 %v2948_v4, %v2856_v26  ;;  %s2735_s5 = int_to_ptr.vmem [resolvable:$true] %s2734_s5 }
 0xb87   :  { %s3465_s25 = scalar_lea.vmem %s2735_s5, 512  ;;  %p3470_p7 = scmp.lt.s32.totalorder %s2735_s5, %s2735_s5 }
 0xb88   :  { %p3466_p6 = scmp.ne.s32.totalorder %s2735_s5, %s3465_s25  ;;  %p3471_p8 = scmp.lt.s32.totalorder %s3465_s25, %s3465_s25 }
 0xb8a   :  { %p3472_p9 = por %p3471_p8, %p3470_p7 }
 0xb8c   :  { %p3473_p10 = pnand %p3472_p9, %p3466_p6 }
 0xc16   :  { %v2965_v48 = vpop.f32.mrb[56].mxu1 }
 0xc17   :  { %v2966_v11 = vpop.f32.mrb[57].mxu1 }
 0xc18   :  { %v2967_v38 = vadd.f32 %v2966_v11, %v2965_v48  ;;  %v2968_v23 = vpop.f32.mrb[58].mxu1 }
 0xc19   :  { %v2969_v28 = vpop.f32.mrb[59].mxu1 }
 0xc1a   :  { %v2699_v25 = vadd.f32 %v2967_v38, %v2650_v16  ;;  %v2970_v22 = vadd.f32 %v2969_v28, %v2968_v23 }
 0xc1c   :  { %2713 = vst [vmem:[#allocation12] sm:$0xff] %v2699_v25  ;;  %v2702_v37 = vadd.f32 %v2970_v22, %v2653_v31 }
 0xc1e   :  { %2714 = vst [vmem:[#allocation12 + $0x8] sm:$0xff] %v2702_v37 }
 0xc4f   :  { %v2971_v15 = vpop.f32.mrb[60].mxu1 }
 0xc50   :  { %v2972_v2 = vpop.f32.mrb[61].mxu1 }
 0xc51   :  { %v2973_v54 = vadd.f32 %v2972_v2, %v2971_v15  ;;  %v2974_v19 = vpop.f32.mrb[62].mxu1 }
 0xc52   :  { %v2975_v17 = vpop.f32.mrb[63].mxu1 }
 0xc53   :  { %v2707_v46 = vadd.f32 %v2973_v54, %v2658_v59  ;;  %v2976_v45 = vadd.f32 %v2975_v17, %v2974_v19 }
 0xc55   :  { %2715 = vst [vmem:[#allocation12 + $0x10] sm:$0xff] %v2707_v46  ;;  %v2710_v14 = vadd.f32 %v2976_v45, %v2661_v8 }
 0xc57   :  { %2716 = vst [vmem:[#allocation12 + $0x18] sm:$0xff] %v2710_v14 }
 0xc58   :  { %3476 = shalt.err (!%p3473_p10)
}
 0xc59   :  { %s3477_s14 = scalar_lea.hbm %s4694_s7, 512 }
 0xc5a   :  { %p3478_p11 = scmp.ne.s32.totalorder %s4694_s7, %s3477_s14  ;;  %p3481_p12 = scmp.lt.u32.totalorder %s3477_s14, %s4694_s7 }
 0xc5c   :  { %p3483_p13 = pnand %p3481_p12, %p3478_p11 }
 0xc5e   :  { %3486 = shalt.err (!%p3483_p13)
}
 0xc5f   :  { %2740 = dma.vmem_to_hbm [thread:$0]  %s2735_s5, 512, %s4694_s7, [#allocation13], %s3504_s3, %s3504_s3, %s3505_s15  }
 0xc60   :  { %3493 = dma.done.wait [#allocation4], 2048  }
 0xc61   :  { %3494 = vsyncadd [#allocation4], 4294965248 }
 0xc62   :  { %3495 = dma.done.wait [#allocation13], 512  }
 0xc63   :  { %3496 = vsyncadd [#allocation13], 4294966784 }
 0xc64   :  { %2747 = vsyncpa [#allocation3], 1 }
 0xc65   :  { %2748 = vsyncpa [#allocation6], 1 }
 0xc66   :  { %2749 = vsyncpa [#allocation9], 1 }
 0xc67   :  { %2750 = vsyncpa [#allocation4], 1 }
 0xc68   :  { %2751 = vsyncpa [#allocation13], 1 }

</bundles_post_ra>
